<compile_context>
chip_gen: v7x
topology: tpu7x:2x2x1
jax: 0.10.0
libtpu: 0.0.40
codegen_flags: <defaults>
</compile_context>

<pallas_src>
import functools
import math

import jax
import jax.numpy as jnp
from jax import lax
from jax.experimental import pallas as pl
from jax.experimental.pallas import tpu as pltpu


_DFF_CHUNK = 512          # hidden-axis chunk bounding the live h1 intermediate
_STATIC_BATCH_UNROLL = 8  # max batch rows unrolled as straight-line code


def _xbound_kernel(tgt_ref, fusion_ref, w1_ref, w2_ref, pk_ref, out_ref):
    """One (NB, C, TL) channel-major block.

    tgt_ref:    (NB, C, TL) token tile(s); lane axis = tokens (lane-dense).
    fusion_ref: (NB, C, 1)  precomputed cross-attention output per batch row.
    w1_ref:     (dff, C)    linear1 weight (torch layout, used as W1 @ x).
    w2_ref:     (C, dff)    linear2 weight (torch layout, used as W2 @ h).
    pk_ref:     (P, 6)      packed per-channel vectors, columns =
                            [b1, b2, ln1_g, ln1_b, ln2_g, ln2_b], zero padded.
    """
    dff, C = w1_ref.shape
    NB, _, TL = tgt_ref.shape

    pk = pk_ref[...].astype(jnp.float32)
    b2 = pk[:C, 1:2]
    g1, be1 = pk[:C, 2:3], pk[:C, 3:4]
    g2, be2 = pk[:C, 4:5], pk[:C, 5:6]

    def ffn(xn):
        # linear1 -> LeakyReLU(0.01) -> linear2 (dropout p == 0 -> identity).
        if dff <= _DFF_CHUNK + _DFF_CHUNK // 2:
            h1 = jnp.dot(w1_ref[...].astype(jnp.float32), xn,
                         preferred_element_type=jnp.float32) + pk[:dff, 0:1]
            h1 = jnp.where(h1 >= 0, h1, 0.01 * h1)
            return jnp.dot(w2_ref[...].astype(jnp.float32), h1,
                           preferred_element_type=jnp.float32) + b2
        # Large dff: chunk the hidden axis so the live (chunk, TL) h1 tile
        # stays a few MiB (avoids a spill-bound regime after enlarging TL,
        # which matters most on v7x's 64 MiB VMEM).
        t1 = jnp.zeros((C, TL), jnp.float32)
        for k0 in range(0, dff, _DFF_CHUNK):
            k1 = min(dff, k0 + _DFF_CHUNK)
            h1 = jnp.dot(w1_ref[k0:k1, :].astype(jnp.float32), xn,
                         preferred_element_type=jnp.float32) + pk[k0:k1, 0:1]
            h1 = jnp.where(h1 >= 0, h1, 0.01 * h1)
            t1 = t1 + jnp.dot(w2_ref[:, k0:k1].astype(jnp.float32), h1,
                              preferred_element_type=jnp.float32)
        return t1 + b2

    def one_batch_row(nb):
        # Cross-attention with a single KV token == per-(batch, channel)
        # constant broadcast over the token (lane) axis; residual add.
        x = tgt_ref[nb].astype(jnp.float32) + fusion_ref[nb].astype(jnp.float32)

        # LayerNorm 1 over d_model (= channel axis), eps=1e-5, biased variance.
        mu = jnp.mean(x, axis=0, keepdims=True)
        var = jnp.mean((x - mu) ** 2, axis=0, keepdims=True)
        xn = (x - mu) * lax.rsqrt(var + 1e-5) * g1 + be1            # (C, TL)

        # Feed-forward + residual + LayerNorm 2.
        y = xn + ffn(xn)
        mu2 = jnp.mean(y, axis=0, keepdims=True)
        var2 = jnp.mean((y - mu2) ** 2, axis=0, keepdims=True)
        out_ref[nb] = ((y - mu2) * lax.rsqrt(var2 + 1e-5) * g2 + be2
                       ).astype(out_ref.dtype)

    if NB <= _STATIC_BATCH_UNROLL:
        for nb in range(NB):                 # small static unroll
            one_batch_row(nb)
    else:
        @pl.loop(0, NB)                      # many packed rows: real loop
        def _(nb):
            one_batch_row(nb)


def _round_up(v, m):
    return ((v + m - 1) // m) * m


def _choose_block(B, C, L, dff):
    """Pick (NB, TL): batch rows per block and token-lane tile width.

    Targets: >= ~4 MiB of in+out HBM traffic per grid step (amortizes the
    ~0.35 us fixed per-step pipeline cost), per-step VMEM footprint within a
    32 MiB budget (safe headroom under v7x's 64 MiB physical VMEM), and
    lane-dense blocks (TL a multiple of 128, or whole batch rows packed into
    one block when L < 128 instead of B tiny masked-store steps).
    """
    item = 4                                    # f32 end to end
    target_step_bytes = 4 << 20                 # in + out HBM bytes per step
    vmem_budget = 32 << 20                      # >=16 MiB headroom on v7x

    chunked = dff > _DFF_CHUNK + _DFF_CHUNK // 2
    dff_live = _DFF_CHUNK if chunked else dff
    # Weights / packed vectors / fusion (worst case: double buffered).
    fixed = item * (4 * dff * C + 12 * max(C, dff) + 4 * C)
    # Per token column: double-buffered in+out (4C) + live f32 temps.
    per_col = item * (4 * C + 3 * C + dff_live)
    max_cols = max(8, (vmem_budget - fixed) // per_col)
    cols = max(128, min(target_step_bytes // (2 * item * C), max_cols))

    if L <= cols:
        TL = L
        NB = max(1, min(B, cols // L))
        for cand in range(NB, max(0, NB // 2), -1):   # prefer NB | B (avoid a
            if B % cand == 0:                         # ragged masked batch tail)
                NB = cand
                break
    else:
        NB = 1
        TL = max(128, (cols // 128) * 128)
        for cand in range(TL, max(127, TL // 2), -128):  # prefer TL | L (avoid a
            if L % cand == 0:                            # ragged masked lane tail)
                TL = cand
                break

    # v7x megacore: if everything collapsed into a single grid step but that
    # step moves a non-trivial number of bytes, split it so both TensorCores
    # each get one balanced "parallel" iteration (no-op on v5e/v6e).
    if pl.cdiv(B, NB) * pl.cdiv(L, TL) == 1 and 2 * NB * C * TL * item >= (1 << 20):
        if NB >= 2:
            NB = (NB + 1) // 2
        elif TL >= 256:
            TL = _round_up(TL // 2, 128)

    return NB, TL


@functools.partial(jax.jit, static_argnames=("single_buffer_weights",))
def _forward_impl(tgt, src, params, single_buffer_weights):
    B, C, H, W = tgt.shape
    L = H * W
    if src.shape != (B, 1, C):
        raise ValueError(
            "xboundlearner kernel requires src of shape (B, 1, C): the fused "
            f"single-KV-token cross-attention shortcut needs it. Got {src.shape}.")
    dff = params["w1"].shape[0]
    P = params["packed"].shape[0]

    # Channel-major token slab: pure reshape, no HBM transpose round-trip.
    x = tgt.reshape(B, C, L)

    # Hoisted cross-attention: KV length 1 => softmax == 1 for every head, so
    # attn_out = out_proj(value_proj(src)), independent of the queries.  This
    # tiny (B,C)@(C,C)@(C,C) chain runs once in XLA instead of per token tile.
    s = src.reshape(B, C).astype(jnp.float32)
    fusion = (s @ params["wv_t"] + params["bv"]) @ params["wo_t"] + params["bo"]
    fusion = fusion[:, :, None]                                    # (B, C, 1)

    NB, TL = _choose_block(B, C, L, dff)
    grid = (pl.cdiv(B, NB), pl.cdiv(L, TL))   # batch-blocks outer, tokens inner

    if single_buffer_weights:
        # Constant-index operands need no double buffering: halve their VMEM
        # footprint and drop the redundant DMA descriptors.
        const_mode = dict(pipeline_mode=pl.Buffered(1))
        wbuf = 1
    else:
        const_mode = {}
        wbuf = 2

    # Explicit scoped-VMEM request: v5e's default is only 16 MiB while v7x has
    # 64 MiB physical; request what this tiling needs (2x margin), capped
    # safely below v7x's physical capacity.
    chunked = dff > _DFF_CHUNK + _DFF_CHUNK // 2
    dff_live = _DFF_CHUNK if chunked else dff
    vmem_need = 4 * ((4 * C + 3 * C + dff_live) * NB * TL
                     + wbuf * (2 * dff * C + 6 * P) + 4 * NB * C)
    vmem_limit = int(min(48 << 20, max(2 * vmem_need, 32 << 20)))

    out = pl.pallas_call(
        _xbound_kernel,
        out_shape=jax.ShapeDtypeStruct((B, C, L), tgt.dtype),
        grid=grid,
        in_specs=[
            pl.BlockSpec((NB, C, TL), lambda ib, il: (ib, 0, il)),   # tokens
            pl.BlockSpec((NB, C, 1), lambda ib, il: (ib, 0, 0)),     # fusion
            pl.BlockSpec((dff, C), lambda ib, il: (0, 0), **const_mode),   # W1
            pl.BlockSpec((C, dff), lambda ib, il: (0, 0), **const_mode),   # W2
            pl.BlockSpec((P, 6), lambda ib, il: (0, 0), **const_mode),     # vecs
        ],
        out_specs=pl.BlockSpec((NB, C, TL), lambda ib, il: (ib, 0, il)),
        input_output_aliases={0: 0},          # write back over the token slab
        compiler_params=pltpu.CompilerParams(
            dimension_semantics=("parallel", "parallel"),
            vmem_limit_bytes=vmem_limit),
    )(x, fusion, params["w1"], params["w2"], params["packed"])

    return out.reshape(B, C, H, W)


_WEIGHT_BUFFER_MODE = None   # resolved on first call: True if pl.Buffered(1) lowers


def xboundlearner_forward(tgt, src, params):
    """tgt: (B, C, H, W) float; src: (B, 1, C) float -> (B, C, H, W)."""
    global _WEIGHT_BUFFER_MODE
    modes = (True, False) if _WEIGHT_BUFFER_MODE is None else (_WEIGHT_BUFFER_MODE,)
    err = None
    for single_buffer in modes:
        try:
            out = _forward_impl(tgt, src, params,
                                single_buffer_weights=single_buffer)
        except Exception as e:   # pipeline_mode=pl.Buffered(1) unsupported in this
            err = e              # build -> fall back to default double buffering.
            continue
        _WEIGHT_BUFFER_MODE = single_buffer
        return out
    raise err


def make_params(key, d_model, nhead, dim_feedforward):
    """Deterministic synthetic parameters matching the PyTorch module's shapes."""
    ks = jax.random.split(key, 8)
    C, F = d_model, dim_feedforward
    # nn.MultiheadAttention packed in-projection (3C, C) and out_proj (C, C).
    in_proj_w = jax.random.normal(ks[0], (3 * C, C), jnp.float32) / math.sqrt(C)
    in_proj_b = jax.random.normal(ks[1], (3 * C,), jnp.float32) * 0.01
    out_proj_w = jax.random.normal(ks[2], (C, C), jnp.float32) / math.sqrt(C)
    out_proj_b = jax.random.normal(ks[3], (C,), jnp.float32) * 0.01
    lin1_w = jax.random.normal(ks[4], (F, C), jnp.float32) / math.sqrt(C)
    lin1_b = jax.random.normal(ks[5], (F,), jnp.float32) * 0.01
    lin2_w = jax.random.normal(ks[6], (C, F), jnp.float32) / math.sqrt(F)
    lin2_b = jax.random.normal(ks[7], (C,), jnp.float32) * 0.01
    ln1_g = jnp.linspace(0.8, 1.2, C, dtype=jnp.float32)
    ln1_b = jnp.linspace(-0.1, 0.1, C, dtype=jnp.float32)
    ln2_g = jnp.linspace(1.1, 0.9, C, dtype=jnp.float32)
    ln2_b = jnp.linspace(0.1, -0.1, C, dtype=jnp.float32)

    torch_like = dict(in_proj_w=in_proj_w, in_proj_b=in_proj_b,
                      out_proj_w=out_proj_w, out_proj_b=out_proj_b,
                      lin1_w=lin1_w, lin1_b=lin1_b, lin2_w=lin2_w, lin2_b=lin2_b,
                      ln1_g=ln1_g, ln1_b=ln1_b, ln2_g=ln2_g, ln2_b=ln2_b,
                      nhead=nhead)

    # Kernel-friendly layout:
    #  - value / out projections (only used in the hoisted wrapper matmul),
    #  - FFN weights in torch layout (kernel does W @ x, channel-major),
    #  - all per-channel vectors packed into one (P, 6) array -> one operand.
    P = max(C, F)
    pad = lambda v: jnp.pad(v, (0, P - v.shape[0]))
    packed = jnp.stack([pad(lin1_b), pad(lin2_b), pad(ln1_g), pad(ln1_b),
                        pad(ln2_g), pad(ln2_b)], axis=1)          # (P, 6)

    kernel_params = dict(
        wv_t=in_proj_w[2 * C:].T,                # (C, C) value projection^T
        bv=in_proj_b[2 * C:].reshape(1, C),
        wo_t=out_proj_w.T,                        # (C, C) out projection^T
        bo=out_proj_b.reshape(1, C),
        w1=lin1_w,                                # (F, C)
        w2=lin2_w,                                # (C, F)
        packed=packed,                            # (P, 6)
    )
    return torch_like, kernel_params


def reference_forward(tgt, src, p):
    """Pure-JAX reference replicating the PyTorch forward (full multi-head attn)."""
    B, C, H, W = tgt.shape
    L = H * W
    nh = p["nhead"]
    hd = C // nh
    q_seq = tgt.reshape(B, C, L).transpose(2, 0, 1)   # (L, B, C)
    kv_seq = src.transpose(1, 0, 2)                   # (1, B, C)

    Wq, Wk, Wv = p["in_proj_w"][:C], p["in_proj_w"][C:2 * C], p["in_proj_w"][2 * C:]
    bq, bk, bv = p["in_proj_b"][:C], p["in_proj_b"][C:2 * C], p["in_proj_b"][2 * C:]
    Q = q_seq @ Wq.T + bq
    K = kv_seq @ Wk.T + bk
    V = kv_seq @ Wv.T + bv
    Qh = Q.reshape(L, B * nh, hd).transpose(1, 0, 2)
    Kh = K.reshape(1, B * nh, hd).transpose(1, 0, 2)
    Vh = V.reshape(1, B * nh, hd).transpose(1, 0, 2)
    scores = (Qh @ Kh.transpose(0, 2, 1)) / math.sqrt(hd)
    attn = jax.nn.softmax(scores, axis=-1)
    Oh = attn @ Vh
    O = Oh.transpose(1, 0, 2).reshape(L, B, C)
    fusion = O @ p["out_proj_w"].T + p["out_proj_b"]

    x = q_seq + fusion
    mu = x.mean(-1, keepdims=True)
    var = ((x - mu) ** 2).mean(-1, keepdims=True)
    x = (x - mu) / jnp.sqrt(var + 1e-5) * p["ln1_g"] + p["ln1_b"]

    h1 = x @ p["lin1_w"].T + p["lin1_b"]
    h1 = jnp.where(h1 >= 0, h1, 0.01 * h1)
    t1 = h1 @ p["lin2_w"].T + p["lin2_b"]

    y = x + t1
    mu2 = y.mean(-1, keepdims=True)
    var2 = ((y - mu2) ** 2).mean(-1, keepdims=True)
    y = (y - mu2) / jnp.sqrt(var2 + 1e-5) * p["ln2_g"] + p["ln2_b"]
    return y.transpose(1, 2, 0).reshape(B, C, H, W)


if __name__ == "__main__":
    B, C, H, W = 2, 32, 8, 8        # d_model = C = 32
    nhead = 4
    dim_feedforward = 64

    key = jax.random.PRNGKey(0)
    k_tgt, k_src, k_par = jax.random.split(key, 3)
    tgt = jax.random.normal(k_tgt, (B, C, H, W), jnp.float32)
    src = jax.random.normal(k_src, (B, 1, C), jnp.float32)

    torch_like, kernel_params = make_params(k_par, C, nhead, dim_feedforward)

    out = xboundlearner_forward(tgt, src, kernel_params)
    out = jax.block_until_ready(out)

    ref = reference_forward(tgt, src, torch_like)
    assert out.shape == (B, C, H, W)
    assert jnp.allclose(out, ref, atol=1e-4, rtol=1e-4), "mismatch vs reference"

    print("KERNEL_OK")
</pallas_src>

<mosaic_0001>
module attributes {stable_mosaic.version = 11 : i64} {
  func.func @_xbound_kernel(%arg0: i32, %arg1: i32, %arg2: memref<2x32x64xf32, #tpu.memory_space<vmem>>, %arg3: memref<2x32x1xf32, #tpu.memory_space<vmem>>, %arg4: memref<64x32xf32, #tpu.memory_space<vmem>>, %arg5: memref<32x64xf32, #tpu.memory_space<vmem>>, %arg6: memref<64x6xf32, #tpu.memory_space<vmem>>, %arg7: memref<2x32x64xf32, #tpu.memory_space<vmem>>) attributes {dimension_semantics = [#tpu.dimension_semantics<parallel>, #tpu.dimension_semantics<parallel>], iteration_bounds = array<i64: 1, 1>, scalar_prefetch = 0 : i64, scratch_operands = 0 : i64, tpu.core_type = #tpu.core_type<tc>, window_params = [{transform_indices = @transform_0, window_bounds = array<i64: 2, 32, 64>}, {transform_indices = @transform_1, window_bounds = array<i64: 2, 32, 1>}, {pipeline_mode = #tpu.pipeline_mode<synchronous>, transform_indices = @transform_2, window_bounds = array<i64: 64, 32>}, {pipeline_mode = #tpu.pipeline_mode<synchronous>, transform_indices = @transform_3, window_bounds = array<i64: 32, 64>}, {pipeline_mode = #tpu.pipeline_mode<synchronous>, transform_indices = @transform_4, window_bounds = array<i64: 64, 6>}, {transform_indices = @transform_5, window_bounds = array<i64: 2, 32, 64>}]} {
    %c0 = arith.constant 0 : index
    %c0_0 = arith.constant 0 : index
    %0 = vector.load %arg6[%c0, %c0_0] : memref<64x6xf32, #tpu.memory_space<vmem>>, vector<64x6xf32>
    %1 = vector.extract_strided_slice %0 {offsets = [0, 1], sizes = [32, 1], strides = [1, 1]} : vector<64x6xf32> to vector<32x1xf32>
    %2 = vector.extract_strided_slice %0 {offsets = [0, 2], sizes = [32, 1], strides = [1, 1]} : vector<64x6xf32> to vector<32x1xf32>
    %3 = vector.extract_strided_slice %0 {offsets = [0, 3], sizes = [32, 1], strides = [1, 1]} : vector<64x6xf32> to vector<32x1xf32>
    %4 = vector.extract_strided_slice %0 {offsets = [0, 4], sizes = [32, 1], strides = [1, 1]} : vector<64x6xf32> to vector<32x1xf32>
    %5 = vector.extract_strided_slice %0 {offsets = [0, 5], sizes = [32, 1], strides = [1, 1]} : vector<64x6xf32> to vector<32x1xf32>
    %c0_1 = arith.constant 0 : index
    %c0_2 = arith.constant 0 : index
    %c0_3 = arith.constant 0 : index
    %6 = vector.load %arg2[%c0_1, %c0_2, %c0_3] : memref<2x32x64xf32, #tpu.memory_space<vmem>>, vector<1x32x64xf32>
    %7 = vector.shape_cast %6 : vector<1x32x64xf32> to vector<32x64xf32>
    %c0_4 = arith.constant 0 : index
    %c0_5 = arith.constant 0 : index
    %c0_6 = arith.constant 0 : index
    %8 = vector.load %arg3[%c0_4, %c0_5, %c0_6] : memref<2x32x1xf32, #tpu.memory_space<vmem>>, vector<1x32x1xf32>
    %9 = vector.shape_cast %8 : vector<1x32x1xf32> to vector<32x1xf32>
    %10 = vector.broadcast %9 : vector<32x1xf32> to vector<32x64xf32>
    %11 = arith.addf %7, %10 : vector<32x64xf32>
    %cst = arith.constant dense<0.000000e+00> : vector<64xf32>
    %12 = vector.multi_reduction <add>, %11, %cst [0] : vector<32x64xf32> to vector<64xf32>
    %13 = vector.shape_cast %12 : vector<64xf32> to vector<1x64xf32>
    %cst_7 = arith.constant 3.200000e+01 : f32
    %14 = vector.broadcast %cst_7 : f32 to vector<1x64xf32>
    %15 = arith.divf %13, %14 : vector<1x64xf32>
    %16 = vector.broadcast %15 : vector<1x64xf32> to vector<32x64xf32>
    %17 = arith.subf %11, %16 : vector<32x64xf32>
    %18 = arith.mulf %17, %17 : vector<32x64xf32>
    %cst_8 = arith.constant dense<0.000000e+00> : vector<64xf32>
    %19 = vector.multi_reduction <add>, %18, %cst_8 [0] : vector<32x64xf32> to vector<64xf32>
    %20 = vector.shape_cast %19 : vector<64xf32> to vector<1x64xf32>
    %cst_9 = arith.constant 3.200000e+01 : f32
    %21 = vector.broadcast %cst_9 : f32 to vector<1x64xf32>
    %22 = arith.divf %20, %21 : vector<1x64xf32>
    %23 = vector.broadcast %15 : vector<1x64xf32> to vector<32x64xf32>
    %24 = arith.subf %11, %23 : vector<32x64xf32>
    %cst_10 = arith.constant 9.99999974E-6 : f32
    %25 = vector.broadcast %cst_10 : f32 to vector<1x64xf32>
    %26 = arith.addf %22, %25 : vector<1x64xf32>
    %27 = math.rsqrt %26 : vector<1x64xf32>
    %28 = vector.broadcast %27 : vector<1x64xf32> to vector<32x64xf32>
    %29 = arith.mulf %24, %28 : vector<32x64xf32>
    %30 = vector.broadcast %2 : vector<32x1xf32> to vector<32x64xf32>
    %31 = arith.mulf %29, %30 : vector<32x64xf32>
    %32 = vector.broadcast %3 : vector<32x1xf32> to vector<32x64xf32>
    %33 = arith.addf %31, %32 : vector<32x64xf32>
    %c0_11 = arith.constant 0 : index
    %c0_12 = arith.constant 0 : index
    %34 = vector.load %arg4[%c0_11, %c0_12] : memref<64x32xf32, #tpu.memory_space<vmem>>, vector<64x32xf32>
    %cst_13 = arith.constant dense<0.000000e+00> : vector<64x64xf32>
    %35 = tpu.matmul %34, %33, %cst_13 {dimension_numbers = #tpu.dot_dimension_numbers<[1], [0], [0], [1], [0, 0, 1, 1], [], []>} : vector<64x32xf32>, vector<32x64xf32>, vector<64x64xf32> -> vector<64x64xf32>
    %36 = vector.extract_strided_slice %0 {offsets = [0, 0], sizes = [64, 1], strides = [1, 1]} : vector<64x6xf32> to vector<64x1xf32>
    %37 = vector.broadcast %36 : vector<64x1xf32> to vector<64x64xf32>
    %38 = arith.addf %35, %37 : vector<64x64xf32>
    %cst_14 = arith.constant 0.000000e+00 : f32
    %39 = vector.broadcast %cst_14 : f32 to vector<64x64xf32>
    %40 = arith.cmpf oge, %38, %39 : vector<64x64xf32>
    %cst_15 = arith.constant 0.00999999977 : f32
    %41 = vector.broadcast %cst_15 : f32 to vector<64x64xf32>
    %42 = arith.mulf %41, %38 : vector<64x64xf32>
    %43 = arith.select %40, %38, %42 : vector<64x64xi1>, vector<64x64xf32>
    %c0_16 = arith.constant 0 : index
    %c0_17 = arith.constant 0 : index
    %44 = vector.load %arg5[%c0_16, %c0_17] : memref<32x64xf32, #tpu.memory_space<vmem>>, vector<32x64xf32>
    %cst_18 = arith.constant dense<0.000000e+00> : vector<32x64xf32>
    %45 = tpu.matmul %44, %43, %cst_18 {dimension_numbers = #tpu.dot_dimension_numbers<[1], [0], [0], [1], [0, 0, 1, 1], [], []>} : vector<32x64xf32>, vector<64x64xf32>, vector<32x64xf32> -> vector<32x64xf32>
    %46 = vector.broadcast %1 : vector<32x1xf32> to vector<32x64xf32>
    %47 = arith.addf %45, %46 : vector<32x64xf32>
    %48 = arith.addf %33, %47 : vector<32x64xf32>
    %cst_19 = arith.constant dense<0.000000e+00> : vector<64xf32>
    %49 = vector.multi_reduction <add>, %48, %cst_19 [0] : vector<32x64xf32> to vector<64xf32>
    %50 = vector.shape_cast %49 : vector<64xf32> to vector<1x64xf32>
    %cst_20 = arith.constant 3.200000e+01 : f32
    %51 = vector.broadcast %cst_20 : f32 to vector<1x64xf32>
    %52 = arith.divf %50, %51 : vector<1x64xf32>
    %53 = vector.broadcast %52 : vector<1x64xf32> to vector<32x64xf32>
    %54 = arith.subf %48, %53 : vector<32x64xf32>
    %55 = arith.mulf %54, %54 : vector<32x64xf32>
    %cst_21 = arith.constant dense<0.000000e+00> : vector<64xf32>
    %56 = vector.multi_reduction <add>, %55, %cst_21 [0] : vector<32x64xf32> to vector<64xf32>
    %57 = vector.shape_cast %56 : vector<64xf32> to vector<1x64xf32>
    %cst_22 = arith.constant 3.200000e+01 : f32
    %58 = vector.broadcast %cst_22 : f32 to vector<1x64xf32>
    %59 = arith.divf %57, %58 : vector<1x64xf32>
    %60 = vector.broadcast %52 : vector<1x64xf32> to vector<32x64xf32>
    %61 = arith.subf %48, %60 : vector<32x64xf32>
    %cst_23 = arith.constant 9.99999974E-6 : f32
    %62 = vector.broadcast %cst_23 : f32 to vector<1x64xf32>
    %63 = arith.addf %59, %62 : vector<1x64xf32>
    %64 = math.rsqrt %63 : vector<1x64xf32>
    %65 = vector.broadcast %64 : vector<1x64xf32> to vector<32x64xf32>
    %66 = arith.mulf %61, %65 : vector<32x64xf32>
    %67 = vector.broadcast %4 : vector<32x1xf32> to vector<32x64xf32>
    %68 = arith.mulf %66, %67 : vector<32x64xf32>
    %69 = vector.broadcast %5 : vector<32x1xf32> to vector<32x64xf32>
    %70 = arith.addf %68, %69 : vector<32x64xf32>
    %c0_24 = arith.constant 0 : index
    %c0_25 = arith.constant 0 : index
    %c0_26 = arith.constant 0 : index
    %71 = vector.load %arg7[%c0_24, %c0_25, %c0_26] : memref<2x32x64xf32, #tpu.memory_space<vmem>>, vector<1x32x64xf32>
    %72 = vector.shape_cast %71 : vector<1x32x64xf32> to vector<32x64xf32>
    %73 = vector.shape_cast %70 : vector<32x64xf32> to vector<1x32x64xf32>
    tpu.vector_store %arg7[%c0_24, %c0_25, %c0_26], %73 {strides = array<i32>} : memref<2x32x64xf32, #tpu.memory_space<vmem>>, vector<1x32x64xf32>,
    %c1 = arith.constant 1 : index
    %c0_27 = arith.constant 0 : index
    %c0_28 = arith.constant 0 : index
    %74 = vector.load %arg2[%c1, %c0_27, %c0_28] : memref<2x32x64xf32, #tpu.memory_space<vmem>>, vector<1x32x64xf32>
    %75 = vector.shape_cast %74 : vector<1x32x64xf32> to vector<32x64xf32>
    %c1_29 = arith.constant 1 : index
    %c0_30 = arith.constant 0 : index
    %c0_31 = arith.constant 0 : index
    %76 = vector.load %arg3[%c1_29, %c0_30, %c0_31] : memref<2x32x1xf32, #tpu.memory_space<vmem>>, vector<1x32x1xf32>
    %77 = vector.shape_cast %76 : vector<1x32x1xf32> to vector<32x1xf32>
    %78 = vector.broadcast %77 : vector<32x1xf32> to vector<32x64xf32>
    %79 = arith.addf %75, %78 : vector<32x64xf32>
    %cst_32 = arith.constant dense<0.000000e+00> : vector<64xf32>
    %80 = vector.multi_reduction <add>, %79, %cst_32 [0] : vector<32x64xf32> to vector<64xf32>
    %81 = vector.shape_cast %80 : vector<64xf32> to vector<1x64xf32>
    %cst_33 = arith.constant 3.200000e+01 : f32
    %82 = vector.broadcast %cst_33 : f32 to vector<1x64xf32>
    %83 = arith.divf %81, %82 : vector<1x64xf32>
    %84 = vector.broadcast %83 : vector<1x64xf32> to vector<32x64xf32>
    %85 = arith.subf %79, %84 : vector<32x64xf32>
    %86 = arith.mulf %85, %85 : vector<32x64xf32>
    %cst_34 = arith.constant dense<0.000000e+00> : vector<64xf32>
    %87 = vector.multi_reduction <add>, %86, %cst_34 [0] : vector<32x64xf32> to vector<64xf32>
    %88 = vector.shape_cast %87 : vector<64xf32> to vector<1x64xf32>
    %cst_35 = arith.constant 3.200000e+01 : f32
    %89 = vector.broadcast %cst_35 : f32 to vector<1x64xf32>
    %90 = arith.divf %88, %89 : vector<1x64xf32>
    %91 = vector.broadcast %83 : vector<1x64xf32> to vector<32x64xf32>
    %92 = arith.subf %79, %91 : vector<32x64xf32>
    %cst_36 = arith.constant 9.99999974E-6 : f32
    %93 = vector.broadcast %cst_36 : f32 to vector<1x64xf32>
    %94 = arith.addf %90, %93 : vector<1x64xf32>
    %95 = math.rsqrt %94 : vector<1x64xf32>
    %96 = vector.broadcast %95 : vector<1x64xf32> to vector<32x64xf32>
    %97 = arith.mulf %92, %96 : vector<32x64xf32>
    %98 = vector.broadcast %2 : vector<32x1xf32> to vector<32x64xf32>
    %99 = arith.mulf %97, %98 : vector<32x64xf32>
    %100 = vector.broadcast %3 : vector<32x1xf32> to vector<32x64xf32>
    %101 = arith.addf %99, %100 : vector<32x64xf32>
    %c0_37 = arith.constant 0 : index
    %c0_38 = arith.constant 0 : index
    %102 = vector.load %arg4[%c0_37, %c0_38] : memref<64x32xf32, #tpu.memory_space<vmem>>, vector<64x32xf32>
    %cst_39 = arith.constant dense<0.000000e+00> : vector<64x64xf32>
    %103 = tpu.matmul %102, %101, %cst_39 {dimension_numbers = #tpu.dot_dimension_numbers<[1], [0], [0], [1], [0, 0, 1, 1], [], []>} : vector<64x32xf32>, vector<32x64xf32>, vector<64x64xf32> -> vector<64x64xf32>
    %104 = vector.extract_strided_slice %0 {offsets = [0, 0], sizes = [64, 1], strides = [1, 1]} : vector<64x6xf32> to vector<64x1xf32>
    %105 = vector.broadcast %104 : vector<64x1xf32> to vector<64x64xf32>
    %106 = arith.addf %103, %105 : vector<64x64xf32>
    %cst_40 = arith.constant 0.000000e+00 : f32
    %107 = vector.broadcast %cst_40 : f32 to vector<64x64xf32>
    %108 = arith.cmpf oge, %106, %107 : vector<64x64xf32>
    %cst_41 = arith.constant 0.00999999977 : f32
    %109 = vector.broadcast %cst_41 : f32 to vector<64x64xf32>
    %110 = arith.mulf %109, %106 : vector<64x64xf32>
    %111 = arith.select %108, %106, %110 : vector<64x64xi1>, vector<64x64xf32>
    %c0_42 = arith.constant 0 : index
    %c0_43 = arith.constant 0 : index
    %112 = vector.load %arg5[%c0_42, %c0_43] : memref<32x64xf32, #tpu.memory_space<vmem>>, vector<32x64xf32>
    %cst_44 = arith.constant dense<0.000000e+00> : vector<32x64xf32>
    %113 = tpu.matmul %112, %111, %cst_44 {dimension_numbers = #tpu.dot_dimension_numbers<[1], [0], [0], [1], [0, 0, 1, 1], [], []>} : vector<32x64xf32>, vector<64x64xf32>, vector<32x64xf32> -> vector<32x64xf32>
    %114 = vector.broadcast %1 : vector<32x1xf32> to vector<32x64xf32>
    %115 = arith.addf %113, %114 : vector<32x64xf32>
    %116 = arith.addf %101, %115 : vector<32x64xf32>
    %cst_45 = arith.constant dense<0.000000e+00> : vector<64xf32>
    %117 = vector.multi_reduction <add>, %116, %cst_45 [0] : vector<32x64xf32> to vector<64xf32>
    %118 = vector.shape_cast %117 : vector<64xf32> to vector<1x64xf32>
    %cst_46 = arith.constant 3.200000e+01 : f32
    %119 = vector.broadcast %cst_46 : f32 to vector<1x64xf32>
    %120 = arith.divf %118, %119 : vector<1x64xf32>
    %121 = vector.broadcast %120 : vector<1x64xf32> to vector<32x64xf32>
    %122 = arith.subf %116, %121 : vector<32x64xf32>
    %123 = arith.mulf %122, %122 : vector<32x64xf32>
    %cst_47 = arith.constant dense<0.000000e+00> : vector<64xf32>
    %124 = vector.multi_reduction <add>, %123, %cst_47 [0] : vector<32x64xf32> to vector<64xf32>
    %125 = vector.shape_cast %124 : vector<64xf32> to vector<1x64xf32>
    %cst_48 = arith.constant 3.200000e+01 : f32
    %126 = vector.broadcast %cst_48 : f32 to vector<1x64xf32>
    %127 = arith.divf %125, %126 : vector<1x64xf32>
    %128 = vector.broadcast %120 : vector<1x64xf32> to vector<32x64xf32>
    %129 = arith.subf %116, %128 : vector<32x64xf32>
    %cst_49 = arith.constant 9.99999974E-6 : f32
    %130 = vector.broadcast %cst_49 : f32 to vector<1x64xf32>
    %131 = arith.addf %127, %130 : vector<1x64xf32>
    %132 = math.rsqrt %131 : vector<1x64xf32>
    %133 = vector.broadcast %132 : vector<1x64xf32> to vector<32x64xf32>
    %134 = arith.mulf %129, %133 : vector<32x64xf32>
    %135 = vector.broadcast %4 : vector<32x1xf32> to vector<32x64xf32>
    %136 = arith.mulf %134, %135 : vector<32x64xf32>
    %137 = vector.broadcast %5 : vector<32x1xf32> to vector<32x64xf32>
    %138 = arith.addf %136, %137 : vector<32x64xf32>
    %c1_50 = arith.constant 1 : index
    %c0_51 = arith.constant 0 : index
    %c0_52 = arith.constant 0 : index
    %139 = vector.load %arg7[%c1_50, %c0_51, %c0_52] : memref<2x32x64xf32, #tpu.memory_space<vmem>>, vector<1x32x64xf32>
    %140 = vector.shape_cast %139 : vector<1x32x64xf32> to vector<32x64xf32>
    %141 = vector.shape_cast %138 : vector<32x64xf32> to vector<1x32x64xf32>
    tpu.vector_store %arg7[%c1_50, %c0_51, %c0_52], %141 {strides = array<i32>} : memref<2x32x64xf32, #tpu.memory_space<vmem>>, vector<1x32x64xf32>,
    return
  }
  func.func @transform_0(%arg0: i32, %arg1: i32) -> (i32, i32, i32) {
    %c0_i32 = arith.constant 0 : i32
    %c0_i32_0 = arith.constant 0 : i32
    return %arg0, %c0_i32, %arg1 : i32, i32, i32
  }
  func.func @transform_1(%arg0: i32, %arg1: i32) -> (i32, i32, i32) {
    %c0_i32 = arith.constant 0 : i32
    %c0_i32_0 = arith.constant 0 : i32
    %c0_i32_1 = arith.constant 0 : i32
    return %arg0, %c0_i32, %c0_i32_0 : i32, i32, i32
  }
  func.func @transform_2(%arg0: i32, %arg1: i32) -> (i32, i32) {
    %c0_i32 = arith.constant 0 : i32
    %c0_i32_0 = arith.constant 0 : i32
    %c0_i32_1 = arith.constant 0 : i32
    return %c0_i32, %c0_i32_0 : i32, i32
  }
  func.func @transform_3(%arg0: i32, %arg1: i32) -> (i32, i32) {
    %c0_i32 = arith.constant 0 : i32
    %c0_i32_0 = arith.constant 0 : i32
    %c0_i32_1 = arith.constant 0 : i32
    return %c0_i32, %c0_i32_0 : i32, i32
  }
  func.func @transform_4(%arg0: i32, %arg1: i32) -> (i32, i32) {
    %c0_i32 = arith.constant 0 : i32
    %c0_i32_0 = arith.constant 0 : i32
    %c0_i32_1 = arith.constant 0 : i32
    return %c0_i32, %c0_i32_0 : i32, i32
  }
  func.func @transform_5(%arg0: i32, %arg1: i32) -> (i32, i32, i32) {
    %c0_i32 = arith.constant 0 : i32
    %c0_i32_0 = arith.constant 0 : i32
    return %arg0, %c0_i32, %arg1 : i32, i32, i32
  }
}

module attributes {stable_mosaic.version = 11 : i64} {
  func.func @_xbound_kernel(%arg0: i32, %arg1: i32, %arg2: memref<2x32x64xf32, #tpu.memory_space<vmem>>, %arg3: memref<2x32x1xf32, #tpu.memory_space<vmem>>, %arg4: memref<64x32xf32, #tpu.memory_space<vmem>>, %arg5: memref<32x64xf32, #tpu.memory_space<vmem>>, %arg6: memref<64x6xf32, #tpu.memory_space<vmem>>, %arg7: memref<2x32x64xf32, #tpu.memory_space<vmem>>) attributes {dimension_semantics = [#tpu.dimension_semantics<parallel>, #tpu.dimension_semantics<parallel>], iteration_bounds = array<i64: 1, 1>, scalar_prefetch = 0 : i64, scratch_operands = 0 : i64, tpu.core_type = #tpu.core_type<tc>, window_params = [{transform_indices = @transform_0, window_bounds = array<i64: 2, 32, 64>}, {transform_indices = @transform_1, window_bounds = array<i64: 2, 32, 1>}, {pipeline_mode = #tpu.pipeline_mode<synchronous>, transform_indices = @transform_2, window_bounds = array<i64: 64, 32>}, {pipeline_mode = #tpu.pipeline_mode<synchronous>, transform_indices = @transform_3, window_bounds = array<i64: 32, 64>}, {pipeline_mode = #tpu.pipeline_mode<synchronous>, transform_indices = @transform_4, window_bounds = array<i64: 64, 6>}, {transform_indices = @transform_5, window_bounds = array<i64: 2, 32, 64>}]} {
    %c0 = arith.constant 0 : index
    %c0_0 = arith.constant 0 : index
    %0 = vector.load %arg6[%c0, %c0_0] : memref<64x6xf32, #tpu.memory_space<vmem>>, vector<64x6xf32>
    %1 = vector.extract_strided_slice %0 {offsets = [0, 1], sizes = [32, 1], strides = [1, 1]} : vector<64x6xf32> to vector<32x1xf32>
    %2 = vector.extract_strided_slice %0 {offsets = [0, 2], sizes = [32, 1], strides = [1, 1]} : vector<64x6xf32> to vector<32x1xf32>
    %3 = vector.extract_strided_slice %0 {offsets = [0, 3], sizes = [32, 1], strides = [1, 1]} : vector<64x6xf32> to vector<32x1xf32>
    %4 = vector.extract_strided_slice %0 {offsets = [0, 4], sizes = [32, 1], strides = [1, 1]} : vector<64x6xf32> to vector<32x1xf32>
    %5 = vector.extract_strided_slice %0 {offsets = [0, 5], sizes = [32, 1], strides = [1, 1]} : vector<64x6xf32> to vector<32x1xf32>
    %c0_1 = arith.constant 0 : index
    %c0_2 = arith.constant 0 : index
    %c0_3 = arith.constant 0 : index
    %6 = vector.load %arg2[%c0_1, %c0_2, %c0_3] : memref<2x32x64xf32, #tpu.memory_space<vmem>>, vector<1x32x64xf32>
    %7 = vector.shape_cast %6 : vector<1x32x64xf32> to vector<32x64xf32>
    %c0_4 = arith.constant 0 : index
    %c0_5 = arith.constant 0 : index
    %c0_6 = arith.constant 0 : index
    %8 = vector.load %arg3[%c0_4, %c0_5, %c0_6] : memref<2x32x1xf32, #tpu.memory_space<vmem>>, vector<1x32x1xf32>
    %9 = vector.shape_cast %8 : vector<1x32x1xf32> to vector<32x1xf32>
    %10 = vector.broadcast %9 : vector<32x1xf32> to vector<32x64xf32>
    %11 = arith.addf %7, %10 : vector<32x64xf32>
    %cst = arith.constant dense<0.000000e+00> : vector<64xf32>
    %12 = vector.multi_reduction <add>, %11, %cst [0] : vector<32x64xf32> to vector<64xf32>
    %13 = vector.shape_cast %12 : vector<64xf32> to vector<1x64xf32>
    %cst_7 = arith.constant 3.200000e+01 : f32
    %14 = vector.broadcast %cst_7 : f32 to vector<1x64xf32>
    %15 = arith.divf %13, %14 : vector<1x64xf32>
    %16 = vector.broadcast %15 : vector<1x64xf32> to vector<32x64xf32>
    %17 = arith.subf %11, %16 : vector<32x64xf32>
    %18 = arith.mulf %17, %17 : vector<32x64xf32>
    %cst_8 = arith.constant dense<0.000000e+00> : vector<64xf32>
    %19 = vector.multi_reduction <add>, %18, %cst_8 [0] : vector<32x64xf32> to vector<64xf32>
    %20 = vector.shape_cast %19 : vector<64xf32> to vector<1x64xf32>
    %cst_9 = arith.constant 3.200000e+01 : f32
    %21 = vector.broadcast %cst_9 : f32 to vector<1x64xf32>
    %22 = arith.divf %20, %21 : vector<1x64xf32>
    %23 = vector.broadcast %15 : vector<1x64xf32> to vector<32x64xf32>
    %24 = arith.subf %11, %23 : vector<32x64xf32>
    %cst_10 = arith.constant 9.99999974E-6 : f32
    %25 = vector.broadcast %cst_10 : f32 to vector<1x64xf32>
    %26 = arith.addf %22, %25 : vector<1x64xf32>
    %27 = math.rsqrt %26 : vector<1x64xf32>
    %28 = vector.broadcast %27 : vector<1x64xf32> to vector<32x64xf32>
    %29 = arith.mulf %24, %28 : vector<32x64xf32>
    %30 = vector.broadcast %2 : vector<32x1xf32> to vector<32x64xf32>
    %31 = arith.mulf %29, %30 : vector<32x64xf32>
    %32 = vector.broadcast %3 : vector<32x1xf32> to vector<32x64xf32>
    %33 = arith.addf %31, %32 : vector<32x64xf32>
    %c0_11 = arith.constant 0 : index
    %c0_12 = arith.constant 0 : index
    %34 = vector.load %arg4[%c0_11, %c0_12] : memref<64x32xf32, #tpu.memory_space<vmem>>, vector<64x32xf32>
    %cst_13 = arith.constant dense<0.000000e+00> : vector<64x64xf32>
    %35 = tpu.matmul %34, %33, %cst_13 {dimension_numbers = #tpu.dot_dimension_numbers<[1], [0], [0], [1], [0, 0, 1, 1], [], []>} : vector<64x32xf32>, vector<32x64xf32>, vector<64x64xf32> -> vector<64x64xf32>
    %36 = vector.extract_strided_slice %0 {offsets = [0, 0], sizes = [64, 1], strides = [1, 1]} : vector<64x6xf32> to vector<64x1xf32>
    %37 = vector.broadcast %36 : vector<64x1xf32> to vector<64x64xf32>
    %38 = arith.addf %35, %37 : vector<64x64xf32>
    %cst_14 = arith.constant 0.000000e+00 : f32
    %39 = vector.broadcast %cst_14 : f32 to vector<64x64xf32>
    %40 = arith.cmpf oge, %38, %39 : vector<64x64xf32>
    %cst_15 = arith.constant 0.00999999977 : f32
    %41 = vector.broadcast %cst_15 : f32 to vector<64x64xf32>
    %42 = arith.mulf %41, %38 : vector<64x64xf32>
    %43 = arith.select %40, %38, %42 : vector<64x64xi1>, vector<64x64xf32>
    %c0_16 = arith.constant 0 : index
    %c0_17 = arith.constant 0 : index
    %44 = vector.load %arg5[%c0_16, %c0_17] : memref<32x64xf32, #tpu.memory_space<vmem>>, vector<32x64xf32>
    %cst_18 = arith.constant dense<0.000000e+00> : vector<32x64xf32>
    %45 = tpu.matmul %44, %43, %cst_18 {dimension_numbers = #tpu.dot_dimension_numbers<[1], [0], [0], [1], [0, 0, 1, 1], [], []>} : vector<32x64xf32>, vector<64x64xf32>, vector<32x64xf32> -> vector<32x64xf32>
    %46 = vector.broadcast %1 : vector<32x1xf32> to vector<32x64xf32>
    %47 = arith.addf %45, %46 : vector<32x64xf32>
    %48 = arith.addf %33, %47 : vector<32x64xf32>
    %cst_19 = arith.constant dense<0.000000e+00> : vector<64xf32>
    %49 = vector.multi_reduction <add>, %48, %cst_19 [0] : vector<32x64xf32> to vector<64xf32>
    %50 = vector.shape_cast %49 : vector<64xf32> to vector<1x64xf32>
    %cst_20 = arith.constant 3.200000e+01 : f32
    %51 = vector.broadcast %cst_20 : f32 to vector<1x64xf32>
    %52 = arith.divf %50, %51 : vector<1x64xf32>
    %53 = vector.broadcast %52 : vector<1x64xf32> to vector<32x64xf32>
    %54 = arith.subf %48, %53 : vector<32x64xf32>
    %55 = arith.mulf %54, %54 : vector<32x64xf32>
    %cst_21 = arith.constant dense<0.000000e+00> : vector<64xf32>
    %56 = vector.multi_reduction <add>, %55, %cst_21 [0] : vector<32x64xf32> to vector<64xf32>
    %57 = vector.shape_cast %56 : vector<64xf32> to vector<1x64xf32>
    %cst_22 = arith.constant 3.200000e+01 : f32
    %58 = vector.broadcast %cst_22 : f32 to vector<1x64xf32>
    %59 = arith.divf %57, %58 : vector<1x64xf32>
    %60 = vector.broadcast %52 : vector<1x64xf32> to vector<32x64xf32>
    %61 = arith.subf %48, %60 : vector<32x64xf32>
    %cst_23 = arith.constant 9.99999974E-6 : f32
    %62 = vector.broadcast %cst_23 : f32 to vector<1x64xf32>
    %63 = arith.addf %59, %62 : vector<1x64xf32>
    %64 = math.rsqrt %63 : vector<1x64xf32>
    %65 = vector.broadcast %64 : vector<1x64xf32> to vector<32x64xf32>
    %66 = arith.mulf %61, %65 : vector<32x64xf32>
    %67 = vector.broadcast %4 : vector<32x1xf32> to vector<32x64xf32>
    %68 = arith.mulf %66, %67 : vector<32x64xf32>
    %69 = vector.broadcast %5 : vector<32x1xf32> to vector<32x64xf32>
    %70 = arith.addf %68, %69 : vector<32x64xf32>
    %c0_24 = arith.constant 0 : index
    %c0_25 = arith.constant 0 : index
    %c0_26 = arith.constant 0 : index
    %71 = vector.load %arg7[%c0_24, %c0_25, %c0_26] : memref<2x32x64xf32, #tpu.memory_space<vmem>>, vector<1x32x64xf32>
    %72 = vector.shape_cast %71 : vector<1x32x64xf32> to vector<32x64xf32>
    %73 = vector.shape_cast %70 : vector<32x64xf32> to vector<1x32x64xf32>
    tpu.vector_store %arg7[%c0_24, %c0_25, %c0_26], %73 {strides = array<i32>} : memref<2x32x64xf32, #tpu.memory_space<vmem>>, vector<1x32x64xf32>,
    %c1 = arith.constant 1 : index
    %c0_27 = arith.constant 0 : index
    %c0_28 = arith.constant 0 : index
    %74 = vector.load %arg2[%c1, %c0_27, %c0_28] : memref<2x32x64xf32, #tpu.memory_space<vmem>>, vector<1x32x64xf32>
    %75 = vector.shape_cast %74 : vector<1x32x64xf32> to vector<32x64xf32>
    %c1_29 = arith.constant 1 : index
    %c0_30 = arith.constant 0 : index
    %c0_31 = arith.constant 0 : index
    %76 = vector.load %arg3[%c1_29, %c0_30, %c0_31] : memref<2x32x1xf32, #tpu.memory_space<vmem>>, vector<1x32x1xf32>
    %77 = vector.shape_cast %76 : vector<1x32x1xf32> to vector<32x1xf32>
    %78 = vector.broadcast %77 : vector<32x1xf32> to vector<32x64xf32>
    %79 = arith.addf %75, %78 : vector<32x64xf32>
    %cst_32 = arith.constant dense<0.000000e+00> : vector<64xf32>
    %80 = vector.multi_reduction <add>, %79, %cst_32 [0] : vector<32x64xf32> to vector<64xf32>
    %81 = vector.shape_cast %80 : vector<64xf32> to vector<1x64xf32>
    %cst_33 = arith.constant 3.200000e+01 : f32
    %82 = vector.broadcast %cst_33 : f32 to vector<1x64xf32>
    %83 = arith.divf %81, %82 : vector<1x64xf32>
    %84 = vector.broadcast %83 : vector<1x64xf32> to vector<32x64xf32>
    %85 = arith.subf %79, %84 : vector<32x64xf32>
    %86 = arith.mulf %85, %85 : vector<32x64xf32>
    %cst_34 = arith.constant dense<0.000000e+00> : vector<64xf32>
    %87 = vector.multi_reduction <add>, %86, %cst_34 [0] : vector<32x64xf32> to vector<64xf32>
    %88 = vector.shape_cast %87 : vector<64xf32> to vector<1x64xf32>
    %cst_35 = arith.constant 3.200000e+01 : f32
    %89 = vector.broadcast %cst_35 : f32 to vector<1x64xf32>
    %90 = arith.divf %88, %89 : vector<1x64xf32>
    %91 = vector.broadcast %83 : vector<1x64xf32> to vector<32x64xf32>
    %92 = arith.subf %79, %91 : vector<32x64xf32>
    %cst_36 = arith.constant 9.99999974E-6 : f32
    %93 = vector.broadcast %cst_36 : f32 to vector<1x64xf32>
    %94 = arith.addf %90, %93 : vector<1x64xf32>
    %95 = math.rsqrt %94 : vector<1x64xf32>
    %96 = vector.broadcast %95 : vector<1x64xf32> to vector<32x64xf32>
    %97 = arith.mulf %92, %96 : vector<32x64xf32>
    %98 = vector.broadcast %2 : vector<32x1xf32> to vector<32x64xf32>
    %99 = arith.mulf %97, %98 : vector<32x64xf32>
    %100 = vector.broadcast %3 : vector<32x1xf32> to vector<32x64xf32>
    %101 = arith.addf %99, %100 : vector<32x64xf32>
    %c0_37 = arith.constant 0 : index
    %c0_38 = arith.constant 0 : index
    %102 = vector.load %arg4[%c0_37, %c0_38] : memref<64x32xf32, #tpu.memory_space<vmem>>, vector<64x32xf32>
    %cst_39 = arith.constant dense<0.000000e+00> : vector<64x64xf32>
    %103 = tpu.matmul %102, %101, %cst_39 {dimension_numbers = #tpu.dot_dimension_numbers<[1], [0], [0], [1], [0, 0, 1, 1], [], []>} : vector<64x32xf32>, vector<32x64xf32>, vector<64x64xf32> -> vector<64x64xf32>
    %104 = vector.extract_strided_slice %0 {offsets = [0, 0], sizes = [64, 1], strides = [1, 1]} : vector<64x6xf32> to vector<64x1xf32>
    %105 = vector.broadcast %104 : vector<64x1xf32> to vector<64x64xf32>
    %106 = arith.addf %103, %105 : vector<64x64xf32>
    %cst_40 = arith.constant 0.000000e+00 : f32
    %107 = vector.broadcast %cst_40 : f32 to vector<64x64xf32>
    %108 = arith.cmpf oge, %106, %107 : vector<64x64xf32>
    %cst_41 = arith.constant 0.00999999977 : f32
    %109 = vector.broadcast %cst_41 : f32 to vector<64x64xf32>
    %110 = arith.mulf %109, %106 : vector<64x64xf32>
    %111 = arith.select %108, %106, %110 : vector<64x64xi1>, vector<64x64xf32>
    %c0_42 = arith.constant 0 : index
    %c0_43 = arith.constant 0 : index
    %112 = vector.load %arg5[%c0_42, %c0_43] : memref<32x64xf32, #tpu.memory_space<vmem>>, vector<32x64xf32>
    %cst_44 = arith.constant dense<0.000000e+00> : vector<32x64xf32>
    %113 = tpu.matmul %112, %111, %cst_44 {dimension_numbers = #tpu.dot_dimension_numbers<[1], [0], [0], [1], [0, 0, 1, 1], [], []>} : vector<32x64xf32>, vector<64x64xf32>, vector<32x64xf32> -> vector<32x64xf32>
    %114 = vector.broadcast %1 : vector<32x1xf32> to vector<32x64xf32>
    %115 = arith.addf %113, %114 : vector<32x64xf32>
    %116 = arith.addf %101, %115 : vector<32x64xf32>
    %cst_45 = arith.constant dense<0.000000e+00> : vector<64xf32>
    %117 = vector.multi_reduction <add>, %116, %cst_45 [0] : vector<32x64xf32> to vector<64xf32>
    %118 = vector.shape_cast %117 : vector<64xf32> to vector<1x64xf32>
    %cst_46 = arith.constant 3.200000e+01 : f32
    %119 = vector.broadcast %cst_46 : f32 to vector<1x64xf32>
    %120 = arith.divf %118, %119 : vector<1x64xf32>
    %121 = vector.broadcast %120 : vector<1x64xf32> to vector<32x64xf32>
    %122 = arith.subf %116, %121 : vector<32x64xf32>
    %123 = arith.mulf %122, %122 : vector<32x64xf32>
    %cst_47 = arith.constant dense<0.000000e+00> : vector<64xf32>
    %124 = vector.multi_reduction <add>, %123, %cst_47 [0] : vector<32x64xf32> to vector<64xf32>
    %125 = vector.shape_cast %124 : vector<64xf32> to vector<1x64xf32>
    %cst_48 = arith.constant 3.200000e+01 : f32
    %126 = vector.broadcast %cst_48 : f32 to vector<1x64xf32>
    %127 = arith.divf %125, %126 : vector<1x64xf32>
    %128 = vector.broadcast %120 : vector<1x64xf32> to vector<32x64xf32>
    %129 = arith.subf %116, %128 : vector<32x64xf32>
    %cst_49 = arith.constant 9.99999974E-6 : f32
    %130 = vector.broadcast %cst_49 : f32 to vector<1x64xf32>
    %131 = arith.addf %127, %130 : vector<1x64xf32>
    %132 = math.rsqrt %131 : vector<1x64xf32>
    %133 = vector.broadcast %132 : vector<1x64xf32> to vector<32x64xf32>
    %134 = arith.mulf %129, %133 : vector<32x64xf32>
    %135 = vector.broadcast %4 : vector<32x1xf32> to vector<32x64xf32>
    %136 = arith.mulf %134, %135 : vector<32x64xf32>
    %137 = vector.broadcast %5 : vector<32x1xf32> to vector<32x64xf32>
    %138 = arith.addf %136, %137 : vector<32x64xf32>
    %c1_50 = arith.constant 1 : index
    %c0_51 = arith.constant 0 : index
    %c0_52 = arith.constant 0 : index
    %139 = vector.load %arg7[%c1_50, %c0_51, %c0_52] : memref<2x32x64xf32, #tpu.memory_space<vmem>>, vector<1x32x64xf32>
    %140 = vector.shape_cast %139 : vector<1x32x64xf32> to vector<32x64xf32>
    %141 = vector.shape_cast %138 : vector<32x64xf32> to vector<1x32x64xf32>
    tpu.vector_store %arg7[%c1_50, %c0_51, %c0_52], %141 {strides = array<i32>} : memref<2x32x64xf32, #tpu.memory_space<vmem>>, vector<1x32x64xf32>,
    return
  }
  func.func @transform_0(%arg0: i32, %arg1: i32) -> (i32, i32, i32) {
    %c0_i32 = arith.constant 0 : i32
    %c0_i32_0 = arith.constant 0 : i32
    return %arg0, %c0_i32, %arg1 : i32, i32, i32
  }
  func.func @transform_1(%arg0: i32, %arg1: i32) -> (i32, i32, i32) {
    %c0_i32 = arith.constant 0 : i32
    %c0_i32_0 = arith.constant 0 : i32
    %c0_i32_1 = arith.constant 0 : i32
    return %arg0, %c0_i32, %c0_i32_0 : i32, i32, i32
  }
  func.func @transform_2(%arg0: i32, %arg1: i32) -> (i32, i32) {
    %c0_i32 = arith.constant 0 : i32
    %c0_i32_0 = arith.constant 0 : i32
    %c0_i32_1 = arith.constant 0 : i32
    return %c0_i32, %c0_i32_0 : i32, i32
  }
  func.func @transform_3(%arg0: i32, %arg1: i32) -> (i32, i32) {
    %c0_i32 = arith.constant 0 : i32
    %c0_i32_0 = arith.constant 0 : i32
    %c0_i32_1 = arith.constant 0 : i32
    return %c0_i32, %c0_i32_0 : i32, i32
  }
  func.func @transform_4(%arg0: i32, %arg1: i32) -> (i32, i32) {
    %c0_i32 = arith.constant 0 : i32
    %c0_i32_0 = arith.constant 0 : i32
    %c0_i32_1 = arith.constant 0 : i32
    return %c0_i32, %c0_i32_0 : i32, i32
  }
  func.func @transform_5(%arg0: i32, %arg1: i32) -> (i32, i32, i32) {
    %c0_i32 = arith.constant 0 : i32
    %c0_i32_0 = arith.constant 0 : i32
    return %arg0, %c0_i32, %arg1 : i32, i32, i32
  }
}

</mosaic_0001>

<bundles_post_ra>
// kernel: _forward_impl.1
= control target key start
LH: loop header
LB: loop body
LE: loop exit
PB: predicated region body
PF: predicated region fallthrough
CT: control target
= control target key end

     0   :  { %v1209_v0 = vmov 0   ;;  %v1210_v10 = vmov 2   ;;  %v1211_v12 = vmov 3   ;;  %vm192_vm0 = vcmask 261120   ;;  %s1538_s1 = inlined_call_operand.vmem [shape: f32[2,32,1], index: 1, kind: input, shape index: {}]   ;;  %s1539_s4 = inlined_call_operand.vmem [shape: f32[64,6], index: 4, kind: input, shape index: {}]   ;;  %s1540_s2 = inlined_call_operand.vmem [shape: f32[64,32], index: 2, kind: input, shape index: {}]   ;;  %s1541_s0 = inlined_call_operand.vmem [shape: f32[2,32,64], index: 0, kind: input, shape index: {}, may-alias: {0,5}]   ;;  %s1542_s3 = inlined_call_operand.vmem [shape: f32[32,64], index: 3, kind: input, shape index: {}]   ;;  %s1543_s5 = inlined_call_operand.vmem [shape: f32[2,32,64], index: 5, kind: output, shape index: {}, may-alias: {0,5}]  }
   0x1   :  { %1185 = vset.pattern.permute.xlu1 %v1209_v0  ;;  %1184 = vset.pattern.permute.xlu0 %v1209_v0  ;;  %v34_v1 = vld [vmem:[%s1538_s1 + $0x10] sm:$0xff]  ;;  %v32_v2 = vld [vmem:[%s1538_s1] sm:$0xff]  ;;  %v35_v3 = vld [vmem:[%s1538_s1 + $0x18] sm:$0xff]  ;;  %vm60_vm1 = vcmask 523264  }
   0x2   :  { %48 = vperm.xlu1 %1185, %v34_v1   ;;  %38 = vperm.xlu0 %1184, %v32_v2   ;;  %v33_v4 = vld [vmem:[%s1538_s1 + $0x8] sm:$0xff]  ;;  %v978_v6 = vld [vmem:[%s1538_s1 + $0x20] sm:$0xff]  ;;  %v981_v7 = vld [vmem:[%s1538_s1 + $0x38] sm:$0xff] }
   0x3   :  { %v979_v5 = vld [vmem:[%s1538_s1 + $0x28] sm:$0xff]  ;;  %v980_v8 = vld [vmem:[%s1538_s1 + $0x30] sm:$0xff]  ;;  %v1279_v11 = vld [vmem:[%s1539_s4] sm:$0xff] }
   0x4   :  { %v1274_v9 = vld [vmem:[%s1539_s4 + $0x8] sm:$0xff]  ;;  %v1288_v13 = vld [vmem:[%s1539_s4 + $0x10] sm:$0xff]  ;;  %v1295_v14 = vld [vmem:[%s1539_s4 + $0x18] sm:$0xff] }
   0x5   :  { %v1308_v15 = vld [vmem:[%s1540_s2] sm:$0xff]  ;;  %v25_v17 = vld [vmem:[%s1539_s4 + $0x28] sm:$0xff]  ;;  %v26_v18 = vld [vmem:[%s1539_s4 + $0x30] sm:$0xff] }
   0x6   :  { %53 = vperm.xlu1 %1185, %v35_v3   ;;  %43 = vperm.xlu0 %1184, %v33_v4   ;;  %v24_v16 = vld [vmem:[%s1539_s4 + $0x20] sm:$0xff]  ;;  %v27_v19 = vld [vmem:[%s1539_s4 + $0x38] sm:$0xff]  ;;  %v30_v23 = vld [vmem:[%s1541_s0 + $0x10] sm:$0xff] }
   0x7   :  { %1054 = vmatprep.mubr.msk.f32.mxu0 %vm192_vm0, %v1308_v15  ;;  %v28_v22 = vld [vmem:[%s1541_s0] sm:$0xff]  ;;  %v29_v24 = vld [vmem:[%s1541_s0 + $0x8] sm:$0xff]  ;;  %v31_v27 = vld [vmem:[%s1541_s0 + $0x18] sm:$0xff] }
   0x8   :  { %v975_v31 = vld [vmem:[%s1541_s0 + $0x28] sm:$0xff]  ;;  %v974_v32 = vld [vmem:[%s1541_s0 + $0x20] sm:$0xff]  ;;  %v977_v43 = vld [vmem:[%s1541_s0 + $0x38] sm:$0xff] }
   0x9   :  { %v976_v44 = vld [vmem:[%s1541_s0 + $0x30] sm:$0xff] }
   0xa   :  { %570 = vperm.xlu1 %1185, %v979_v5   ;;  %565 = vperm.xlu0 %1184, %v978_v6  }
   0xe   :  { %580 = vperm.xlu1 %1185, %v981_v7   ;;  %575 = vperm.xlu0 %1184, %v980_v8  }
  0x12   :  { %1187 = vset.pattern.permute.xlu1 %v1210_v10  ;;  %1186 = vset.pattern.permute.xlu0 %v1210_v10 }
  0x13   :  { %111 = vperm.xlu1 %1187, %v1274_v9   ;;  %106 = vperm.xlu0 %1186, %v1279_v11  }
  0x17   :  { %1188 = vset.pattern.permute.xlu1 %v1211_v12  ;;  %1189 = vset.pattern.permute.xlu0 %v1211_v12 }
  0x18   :  { %129 = vperm.xlu1 %1188, %v1279_v11   ;;  %133 = vperm.xlu0 %1189, %v1274_v9  }
  0x1c   :  { %1190 = vset.pattern.permute.xlu1 %v1210_v10  ;;  %137 = vperm.xlu0 %1189, %v1288_v13  }
  0x1d   :  { %116 = vperm.xlu1 %1190, %v1288_v13  }
  0x20   :  { %1192 = vset.pattern.permute.xlu0 %v1209_v0 }
  0x21   :  { %121 = vperm.xlu1 %1190, %v1295_v14   ;;  %157 = vperm.xlu0 %1192, %v1279_v11  }
  0x25   :  { %1191 = vset.pattern.permute.xlu1 %v1211_v12  ;;  %169 = vperm.xlu0 %1192, %v1295_v14  }
  0x26   :  { %141 = vperm.xlu1 %1191, %v1295_v14  }
  0x29   :  { %179 = vperm.xlu0 %1192, %v25_v17  }
  0x2a   :  { %1193 = vset.pattern.permute.xlu1 %v1209_v0 }
  0x2b   :  { %161 = vperm.xlu1 %1193, %v1274_v9  }
  0x2d   :  { %189 = vperm.xlu0 %1192, %v27_v19  }
  0x2f   :  { %165 = vperm.xlu1 %1193, %v1288_v13  }
  0x33   :  { %174 = vperm.xlu1 %1193, %v24_v16  }
  0x37   :  { %184 = vperm.xlu1 %1193, %v26_v18  }
  0x81   :  { %v49_v20 = vpop.permute.xlu1 %48  ;;  %v39_v21 = vpop.permute.xlu0 %38 }
  0x82   :  { %v56_v25 = vadd.f32 %v39_v21, %v28_v22  ;;  %v58_v29 = vadd.f32 %v49_v20, %v30_v23 }
  0x84   :  { %v61_v33 = vsel %vm60_vm1, %v56_v25, 0.0  ;;  %v64_v39 = vsel %vm60_vm1, %v58_v29, 0.0 }
  0x85   :  { %v54_v26 = vpop.permute.xlu1 %53  ;;  %v44_v28 = vpop.permute.xlu0 %43 }
  0x86   :  { %v57_v30 = vadd.f32 %v44_v28, %v29_v24  ;;  %v59_v34 = vadd.f32 %v54_v26, %v31_v27 }
  0x88   :  { %v62_v35 = vsel %vm60_vm1, %v57_v30, 0.0  ;;  %v66_v45 = vsel %vm60_vm1, %v59_v34, 0.0 }
  0x89   :  { %v63_v36 = vadd.f32 %v62_v35, %v61_v33  ;;  %v571_v37 = vpop.permute.xlu1 %570  ;;  %v566_v38 = vpop.permute.xlu0 %565 }
  0x8a   :  { %v584_v40 = vadd.f32 %v975_v31, %v571_v37  ;;  %v583_v41 = vadd.f32 %v974_v32, %v566_v38 }
  0x8b   :  { %v65_v42 = vadd.f32 %v64_v39, %v63_v36 }
  0x8c   :  { %v588_v46 = vsel %vm60_vm1, %v584_v40, 0.0  ;;  %v587_v47 = vsel %vm60_vm1, %v583_v41, 0.0 }
  0x8d   :  { %v67_v48 = vadd.f32 %v66_v45, %v65_v42  ;;  %v581_v49 = vpop.permute.xlu1 %580  ;;  %v576_v50 = vpop.permute.xlu0 %575  ;;  %v589_v54 = vadd.f32 %v588_v46, %v587_v47 }
  0x8e   :  { %v586_v51 = vadd.f32 %v977_v43, %v581_v49  ;;  %v585_v52 = vadd.f32 %v976_v44, %v576_v50 }
  0x8f   :  { %v68_v53 = vrot.slane %v67_v48, 4 }
  0x90   :  { %v590_v55 = vsel %vm60_vm1, %v585_v52, 0.0  ;;  %v592_v58 = vsel %vm60_vm1, %v586_v51, 0.0 }
  0x91   :  { %v69_v56 = vadd.f32 %v68_v53, %v67_v48  ;;  %v591_v57 = vadd.f32 %v590_v55, %v589_v54 }
  0x93   :  { %v70_v59 = vrot.slane %v69_v56, 2  ;;  %v593_v60 = vadd.f32 %v592_v58, %v591_v57 }
  0x95   :  { %v71_v61 = vadd.f32 %v70_v59, %v69_v56  ;;  %v594_v62 = vrot.slane %v593_v60, 4 }
  0x97   :  { %v72_v63 = vrot.slane %v71_v61, 1  ;;  %v595_v1 = vadd.f32 %v594_v62, %v593_v60  ;;  %v107_v60 = vpop.permute.xlu0 %106 }
  0x99   :  { %v73_v2 = vadd.f32 %v72_v63, %v71_v61  ;;  %v596_v3 = vrot.slane %v595_v1, 2 }
  0x9b   :  { %v75_v4 = vmul.f32 0.03125, %v73_v2  ;;  %v597_v5 = vadd.f32 %v596_v3, %v595_v1  ;;  %v134_v2 = vpop.permute.xlu0 %133 }
  0x9d   :  { %v76_v6 = vsub.f32 %v56_v25, %v75_v4  ;;  %v77_v7 = vsub.f32 %v57_v30, %v75_v4  ;;  %v78_v8 = vsub.f32 %v58_v29, %v75_v4  ;;  %v79_v10 = vsub.f32 %v59_v34, %v75_v4 }
  0x9e   :  { %v598_v12 = vrot.slane %v597_v5, 1 }
  0x9f   :  { %v80_v16 = vmul.f32 %v76_v6, %v76_v6  ;;  %v81_v17 = vmul.f32 %v77_v7, %v77_v7  ;;  %v82_v18 = vmul.f32 %v78_v8, %v78_v8  ;;  %v83_v20 = vmul.f32 %v79_v10, %v79_v10 }
  0xa0   :  { %v599_v19 = vadd.f32 %v598_v12, %v597_v5 }
  0xa1   :  { %v84_v21 = vsel %vm60_vm1, %v80_v16, 0.0  ;;  %v85_v22 = vsel %vm60_vm1, %v81_v17, 0.0  ;;  %v87_v26 = vsel %vm60_vm1, %v82_v18, 0.0  ;;  %v89_v29 = vsel %vm60_vm1, %v83_v20, 0.0  ;;  %v138_v18 = vpop.permute.xlu0 %137 }
  0xa2   :  { %v86_v23 = vadd.f32 %v85_v22, %v84_v21  ;;  %v600_v24 = vmul.f32 0.03125, %v599_v19 }
  0xa4   :  { %v88_v27 = vadd.f32 %v87_v26, %v86_v23  ;;  %v603_v28 = vsub.f32 %v585_v52, %v600_v24  ;;  %v601_v25 = vsub.f32 %v583_v41, %v600_v24  ;;  %v604_v30 = vsub.f32 %v586_v51, %v600_v24  ;;  %v112_v41 = vpop.permute.xlu1 %111 }
  0xa5   :  { %v602_v31 = vsub.f32 %v584_v40, %v600_v24 }
  0xa6   :  { %v90_v32 = vadd.f32 %v89_v29, %v88_v27  ;;  %v605_v33 = vmul.f32 %v601_v25, %v601_v25  ;;  %v607_v34 = vmul.f32 %v603_v28, %v603_v28  ;;  %v608_v38 = vmul.f32 %v604_v30, %v604_v30 }
  0xa7   :  { %v606_v35 = vmul.f32 %v602_v31, %v602_v31 }
  0xa8   :  { %v91_v36 = vrot.slane %v90_v32, 4  ;;  %v609_v37 = vsel %vm60_vm1, %v605_v33, 0.0  ;;  %v612_v44 = vsel %vm60_vm1, %v607_v34, 0.0  ;;  %v614_v47 = vsel %vm60_vm1, %v608_v38, 0.0  ;;  %v130_v53 = vpop.permute.xlu1 %129 }
  0xa9   :  { %v610_v39 = vsel %vm60_vm1, %v606_v35, 0.0 }
  0xaa   :  { %v92_v42 = vadd.f32 %v91_v36, %v90_v32  ;;  %v611_v43 = vadd.f32 %v610_v39, %v609_v37 }
  0xac   :  { %v93_v45 = vrot.slane %v92_v42, 2  ;;  %v613_v46 = vadd.f32 %v612_v44, %v611_v43  ;;  %v117_v59 = vpop.permute.xlu1 %116  ;;  %v151_v44 = vld [vmem:[%s1540_s2 + $0x18] sm:$0xff] }
  0xae   :  { %v94_v40 = vadd.f32 %v93_v45, %v92_v42  ;;  %v615_v48 = vadd.f32 %v614_v47, %v613_v46  ;;  %v152_v45 = vld [vmem:[%s1540_s2 + $0x20] sm:$0xff]  ;;  %v154_v46 = vld [vmem:[%s1540_s2 + $0x30] sm:$0xff]  ;;  %v155_v47 = vld [vmem:[%s1540_s2 + $0x38] sm:$0xff] }
  0xb0   :  { %v95_v49 = vrot.slane %v94_v40, 1  ;;  %v616_v50 = vrot.slane %v615_v48, 4  ;;  %v122_v1 = vpop.permute.xlu1 %121 }
  0xb2   :  { %v96_v51 = vadd.f32 %v95_v49, %v94_v40  ;;  %v617_v52 = vadd.f32 %v616_v50, %v615_v48  ;;  %v1428_v40 = vld [vmem:[%s1542_s3] sm:$0xff]  ;;  %v1213_v48 = vmov 4   ;;  %v1214_v49 = vmov 5   ;;  %v158_v50 = vpop.permute.xlu0 %157 }
  0xb3   :  { %1082 = vmatprep.mubr.msk.f32.mxu1 %vm60_vm1, %v1428_v40 }
  0xb4   :  { %v97_v54 = vmul.f32 0.03125, %v96_v51  ;;  %v618_v55 = vrot.slane %v617_v52, 2  ;;  %v142_v17 = vpop.permute.xlu1 %141 }
  0xb6   :  { %v98_v56 = vadd.f32 1e-05, %v97_v54  ;;  %v619_v57 = vadd.f32 %v618_v55, %v617_v52  ;;  %v1445_v52 = vpop.permute.xlu0 %169 }
  0xb8   :  { %1201 = vrsqrt.f32 %v98_v56  ;;  %v620_v58 = vrot.slane %v619_v57, 1  ;;  %v162_v51 = vpop.permute.xlu1 %161 }
  0xba   :  { %v621_v61 = vadd.f32 %v620_v58, %v619_v57 }
  0xbc   :  { %v622_v62 = vmul.f32 0.03125, %v621_v61  ;;  %v1447_v54 = vpop.permute.xlu1 %165 }
  0xbe   :  { %v623_v63 = vadd.f32 1e-05, %v622_v62 }
  0xc0   :  { %1203 = vrsqrt.f32 %v623_v63  ;;  %v1453_v62 = vpop.permute.xlu1 %174 }
  0xc2   :  { %v1202_v3 = vpop.eup %1201 }
  0xc3   :  { %v101_v4 = vmul.f32 %v1202_v3, %v77_v7  ;;  %v102_v5 = vmul.f32 %v1202_v3, %v78_v8  ;;  %v100_v12 = vmul.f32 %v1202_v3, %v76_v6  ;;  %v103_v16 = vmul.f32 %v1202_v3, %v79_v10 }
  0xc5   :  { %v125_v19 = vmul.f32 %v112_v41, %v101_v4  ;;  %v126_v20 = vmul.f32 %v117_v59, %v102_v5  ;;  %v124_v21 = vmul.f32 %v107_v60, %v100_v12  ;;  %v127_v22 = vmul.f32 %v122_v1, %v103_v16 }
  0xc7   :  { %v1364_v23 = vadd.f32 %v134_v2, %v125_v19  ;;  %v1366_v24 = vadd.f32 %v142_v17, %v127_v22  ;;  %v1368_v26 = vadd.f32 %v138_v18, %v126_v20  ;;  %v1370_v27 = vadd.f32 %v130_v53, %v124_v21 }
  0xc9   :  { %v1130_v7 = vpack.c.bf16 %v1364_v23, %v1370_v27  ;;  %v1134_v6 = vpack.c.bf16 %v1366_v24, %v1368_v26 }
  0xca   :  { %v1204_v8 = vpop.eup %1203 }
  0xcb   :  { %v626_v10 = vmul.f32 %v1204_v8, %v602_v31  ;;  %v627_v29 = vmul.f32 %v1204_v8, %v603_v28  ;;  %v625_v32 = vmul.f32 %v1204_v8, %v601_v25  ;;  %v628_v33 = vmul.f32 %v1204_v8, %v604_v30  ;;  %1131 = vmatprep.subr.bf16.mxu0 %v1130_v7  ;;  %v149_v28 = vld [vmem:[%s1540_s2 + $0x8] sm:$0xff]  ;;  %v150_v30 = vld [vmem:[%s1540_s2 + $0x10] sm:$0xff] }
  0xcc   :  { %1133 = vmatpush3.bf16.msra.mxu0 %v1130_v7  ;;  %v1457_v7 = vpop.permute.xlu1 %184 }
  0xcd   :  { %v630_v34 = vmul.f32 %v626_v10, %v112_v41  ;;  %v631_v35 = vmul.f32 %v627_v29, %v117_v59  ;;  %v629_v36 = vmul.f32 %v625_v32, %v107_v60  ;;  %v632_v37 = vmul.f32 %v628_v33, %v122_v1  ;;  %1135 = vmatprep.subr.bf16.mxu0 %v1134_v6  ;;  %v153_v41 = vld [vmem:[%s1540_s2 + $0x28] sm:$0xff] }
  0xcf   :  { %v1376_v38 = vadd.f32 %v629_v36, %v130_v53  ;;  %v1378_v39 = vadd.f32 %v630_v34, %v134_v2  ;;  %v1380_v42 = vadd.f32 %v632_v37, %v142_v17  ;;  %v1382_v43 = vadd.f32 %v631_v35, %v138_v18 }
  0xd0   :  { %1137 = vmatpush3.bf16.msra.mxu0 %v1134_v6 }
  0xd1   :  { %v1154_v25 = vpack.c.bf16 %v1378_v39, %v1376_v38  ;;  %v1158_v31 = vpack.c.bf16 %v1380_v42, %v1382_v43 }
  0xd3   :  { %1155 = vmatprep.subr.bf16.mxu0 %v1154_v25  ;;  %1055 = vmatmul.mubr.msk.f32.vlgmr.msra.gmra.mrb[0].mxu0 %vm192_vm0, %v149_v28 }
  0xd4   :  { %1157 = vmatpush3.bf16.msra.mxu0 %v1154_v25  ;;  %1057 = vmatprep.mubr.msk.f32.mxu0 %vm192_vm0, %v150_v30 }
  0xd5   :  { %1159 = vmatprep.subr.bf16.mxu0 %v1158_v31 }
  0xd7   :  { %1058 = vmatmul.mubr.msk.f32.gmra.mrb[2].mxu0 %vm192_vm0, %v151_v44 }
  0xd8   :  { %1161 = vmatpush3.bf16.msra.mxu0 %v1158_v31  ;;  %1060 = vmatprep.mubr.msk.f32.mxu0 %vm192_vm0, %v152_v45 }
  0xdb   :  { %1061 = vmatmul.mubr.msk.f32.gmra.mrb[4].mxu0 %vm192_vm0, %v153_v41 }
  0xdc   :  { %1063 = vmatprep.mubr.msk.f32.mxu0 %vm192_vm0, %v154_v46 }
  0xdf   :  { %1064 = vmatmul.mubr.msk.f32.gmra.mrb[6].mxu0 %vm192_vm0, %v155_v47 }
  0xe0   :  { %1096 = vmatprep.mubr.msk.f32.mxu0 %vm192_vm0, %v1308_v15  ;;  %v1212_v15 = vmov 1  }
  0xe1   :  { %1194 = vset.pattern.permute.xlu1 %v1212_v15  ;;  %1195 = vset.pattern.permute.xlu0 %v1212_v15 }
  0xe2   :  { %351 = vperm.xlu1 %1194, %v1279_v11   ;;  %355 = vperm.xlu0 %1195, %v1274_v9  }
  0xe3   :  { %1097 = vmatmul.mubr.msk.f32.vlgmr.msra.gmra.mrb[8].mxu0 %vm192_vm0, %v149_v28 }
  0xe4   :  { %1099 = vmatprep.mubr.msk.f32.mxu0 %vm192_vm0, %v150_v30 }
  0xe6   :  { %359 = vperm.xlu1 %1194, %v1288_v13   ;;  %1196 = vset.pattern.permute.xlu0 %v1213_v48 }
  0xe7   :  { %1100 = vmatmul.mubr.msk.f32.gmra.mrb[10].mxu0 %vm192_vm0, %v151_v44  ;;  %510 = vperm.xlu0 %1196, %v1279_v11  }
  0xe8   :  { %1102 = vmatprep.mubr.msk.f32.mxu0 %vm192_vm0, %v152_v45 }
  0xea   :  { %363 = vperm.xlu1 %1194, %v1295_v14  }
  0xeb   :  { %1103 = vmatmul.mubr.msk.f32.gmra.mrb[12].mxu0 %vm192_vm0, %v153_v41  ;;  %522 = vperm.xlu0 %1196, %v1295_v14  }
  0xec   :  { %1105 = vmatprep.mubr.msk.f32.mxu0 %vm192_vm0, %v154_v46 }
  0xee   :  { %1197 = vset.pattern.permute.xlu1 %v1213_v48 }
  0xef   :  { %1106 = vmatmul.mubr.msk.f32.gmra.mrb[14].mxu0 %vm192_vm0, %v155_v47  ;;  %514 = vperm.xlu1 %1197, %v1274_v9  }
  0xf0   :  { %1199 = vset.pattern.permute.xlu0 %v1214_v49 }
  0xf1   :  { %534 = vperm.xlu0 %1199, %v1274_v9  }
  0xf3   :  { %518 = vperm.xlu1 %1197, %v1288_v13  }
  0xf5   :  { %1200 = vset.pattern.permute.xlu0 %v1209_v0 }
  0xf7   :  { %1198 = vset.pattern.permute.xlu1 %v1214_v49 }
  0xf8   :  { %530 = vperm.xlu1 %1198, %v1279_v11  }
  0xfc   :  { %538 = vperm.xlu1 %1198, %v1288_v13  }
 0x100   :  { %542 = vperm.xlu1 %1198, %v1295_v14   ;;  %v1450_v14 = vpop.permute.xlu0 %179 }
 0x104   :  { %v190_v20 = vpop.permute.xlu0 %189 }
 0x1a6   :  { %v1056_v53 = vpop.f32.mrb[0].mxu0 }
 0x1a7   :  { %v289_v55 = vadd.f32 %v1056_v53, %v162_v51  ;;  %v283_v9 = vpop.f32.mrb[1].mxu0 }
 0x1a8   :  { %v284_v56 = vadd.f32 %v283_v9, %v158_v50  ;;  %v348_v9 = vld [vmem:[%s1542_s3 + $0x10] sm:$0xff] }
 0x1a9   :  { %v331_v57 = vmul.f32 0.01, %v289_v55  ;;  %vm323_vm2 = vcmp.ge.f32.partialorder %v289_v55, 0.0 }
 0x1aa   :  { %v330_v0 = vmul.f32 0.01, %v284_v56  ;;  %v1059_v58 = vpop.f32.mrb[2].mxu0  ;;  %vm322_vm3 = vcmp.ge.f32.partialorder %v284_v56, 0.0 }
 0x1ab   :  { %v299_v11 = vadd.f32 %v1059_v58, %v1445_v52  ;;  %v293_v13 = vpop.f32.mrb[3].mxu0  ;;  %v339_v59 = vsel %vm323_vm2, %v289_v55, %v331_v57 }
 0x1ac   :  { %v294_v60 = vadd.f32 %v293_v13, %v1447_v54  ;;  %v338_v61 = vsel %vm322_vm3, %v284_v56, %v330_v0 }
 0x1ad   :  { %vm325_vm4 = vcmp.ge.f32.partialorder %v299_v11, 0.0  ;;  %v333_v63 = vmul.f32 0.01, %v299_v11  ;;  %v1138_v1 = vpack.c.bf16 %v339_v59, %v338_v61 }
 0x1ae   :  { %vm324_vm5 = vcmp.ge.f32.partialorder %v294_v60, 0.0  ;;  %v332_v2 = vmul.f32 0.01, %v294_v60  ;;  %v1062_v3 = vpop.f32.mrb[4].mxu0 }
 0x1af   :  { %v309_v4 = vadd.f32 %v1062_v3, %v1450_v14  ;;  %v303_v5 = vpop.f32.mrb[5].mxu0  ;;  %1139 = vmatprep.subr.bf16.mxu1 %v1138_v1  ;;  %v341_v12 = vsel %vm325_vm4, %v299_v11, %v333_v63  ;;  %v349_v11 = vld [vmem:[%s1542_s3 + $0x18] sm:$0xff] }
 0x1b0   :  { %v304_v16 = vadd.f32 %v303_v5, %v1453_v62  ;;  %1141 = vmatpush3.bf16.msra.mxu1 %v1138_v1  ;;  %v340_v17 = vsel %vm324_vm5, %v294_v60, %v332_v2 }
 0x1b1   :  { %vm327_vm6 = vcmp.ge.f32.partialorder %v309_v4, 0.0  ;;  %v335_v18 = vmul.f32 0.01, %v309_v4  ;;  %v1142_v19 = vpack.c.bf16 %v341_v12, %v340_v17 }
 0x1b2   :  { %vm326_vm7 = vcmp.ge.f32.partialorder %v304_v16, 0.0  ;;  %v334_v21 = vmul.f32 0.01, %v304_v16  ;;  %v1065_v22 = vpop.f32.mrb[6].mxu0 }
 0x1b3   :  { %v319_v8 = vadd.f32 %v1065_v22, %v190_v20  ;;  %v313_v6 = vpop.f32.mrb[7].mxu0  ;;  %1143 = vmatprep.subr.bf16.mxu1 %v1142_v19  ;;  %v343_v10 = vsel %vm327_vm6, %v309_v4, %v335_v18 }
 0x1b4   :  { %v314_v29 = vadd.f32 %v313_v6, %v1457_v7  ;;  %1145 = vmatpush3.bf16.msra.mxu1 %v1142_v19  ;;  %v342_v32 = vsel %vm326_vm7, %v304_v16, %v334_v21  ;;  %v352_v19 = vpop.permute.xlu1 %351 }
 0x1b5   :  { %vm329_vm8 = vcmp.ge.f32.partialorder %v319_v8, 0.0  ;;  %v337_v33 = vmul.f32 0.01, %v319_v8  ;;  %v1146_v34 = vpack.c.bf16 %v343_v10, %v342_v32 }
 0x1b6   :  { %vm328_vm9 = vcmp.ge.f32.partialorder %v314_v29, 0.0  ;;  %v336_v35 = vmul.f32 0.01, %v314_v29  ;;  %v1098_v36 = vpop.f32.mrb[8].mxu0 }
 0x1b7   :  { %v741_v37 = vadd.f32 %v1098_v36, %v162_v51  ;;  %1147 = vmatprep.subr.bf16.mxu1 %v1146_v34  ;;  %v735_v28 = vpop.f32.mrb[9].mxu0  ;;  %v345_v25 = vsel %vm329_vm8, %v319_v8, %v337_v33 }
 0x1b8   :  { %v736_v30 = vadd.f32 %v735_v28, %v158_v50  ;;  %1149 = vmatpush3.bf16.msra.mxu1 %v1146_v34  ;;  %v344_v31 = vsel %vm328_vm9, %v314_v29, %v336_v35  ;;  %v347_v50 = vld [vmem:[%s1542_s3 + $0x8] sm:$0xff] }
 0x1b9   :  { %vm775_vm10 = vcmp.ge.f32.partialorder %v741_v37, 0.0  ;;  %v783_v44 = vmul.f32 0.01, %v741_v37  ;;  %v1150_v45 = vpack.c.bf16 %v345_v25, %v344_v31 }
 0x1ba   :  { %vm774_vm11 = vcmp.ge.f32.partialorder %v736_v30, 0.0  ;;  %v782_v41 = vmul.f32 0.01, %v736_v30  ;;  %v1101_v46 = vpop.f32.mrb[10].mxu0 }
 0x1bb   :  { %v751_v47 = vadd.f32 %v1101_v46, %v1445_v52  ;;  %1151 = vmatprep.subr.bf16.mxu1 %v1150_v45  ;;  %v745_v15 = vpop.f32.mrb[11].mxu0  ;;  %v791_v48 = vsel %vm775_vm10, %v741_v37, %v783_v44 }
 0x1bc   :  { %v746_v49 = vadd.f32 %v745_v15, %v1447_v54  ;;  %1153 = vmatpush3.bf16.msra.mxu1 %v1150_v45  ;;  %v790_v51 = vsel %vm774_vm11, %v736_v30, %v782_v41 }
 0x1bd   :  { %vm777_vm12 = vcmp.ge.f32.partialorder %v751_v47, 0.0  ;;  %v785_v53 = vmul.f32 0.01, %v751_v47  ;;  %v1162_v55 = vpack.c.bf16 %v791_v48, %v790_v51 }
 0x1be   :  { %vm776_vm13 = vcmp.ge.f32.partialorder %v746_v49, 0.0  ;;  %v784_v52 = vmul.f32 0.01, %v746_v49  ;;  %v1104_v56 = vpop.f32.mrb[12].mxu0 }
 0x1bf   :  { %v761_v57 = vadd.f32 %v1104_v56, %v1450_v14  ;;  %1083 = vmatmul.mubr.msk.f32.vlgmr.msra.gmra.mrb[0].mxu1 %vm60_vm1, %v347_v50  ;;  %v755_v54 = vpop.f32.mrb[13].mxu0  ;;  %1163 = vmatprep.subr.bf16.mxu1 %v1162_v55  ;;  %v793_v0 = vsel %vm777_vm12, %v751_v47, %v785_v53 }
 0x1c0   :  { %v756_v58 = vadd.f32 %v755_v54, %v1453_v62  ;;  %1165 = vmatpush3.bf16.msra.mxu1 %v1162_v55  ;;  %1085 = vmatprep.mubr.msk.f32.mxu1 %vm60_vm1, %v348_v9  ;;  %v792_v13 = vsel %vm776_vm13, %v746_v49, %v784_v52 }
 0x1c1   :  { %vm779_vm14 = vcmp.ge.f32.partialorder %v761_v57, 0.0  ;;  %v787_v59 = vmul.f32 0.01, %v761_v57  ;;  %v1166_v60 = vpack.c.bf16 %v793_v0, %v792_v13 }
 0x1c2   :  { %vm778_vm15 = vcmp.ge.f32.partialorder %v756_v58, 0.0  ;;  %v786_v14 = vmul.f32 0.01, %v756_v58  ;;  %v1107_v61 = vpop.f32.mrb[14].mxu0 }
 0x1c3   :  { %v771_v63 = vadd.f32 %v1107_v61, %v190_v20  ;;  %1086 = vmatmul.mubr.msk.f32.gmra.mrb[2].mxu1 %vm60_vm1, %v349_v11  ;;  %v765_v1 = vpop.f32.mrb[15].mxu0  ;;  %1167 = vmatprep.subr.bf16.mxu1 %v1166_v60  ;;  %v795_v62 = vsel %vm779_vm14, %v761_v57, %v787_v59  ;;  %v356_v20 = vpop.permute.xlu0 %355 }
 0x1c4   :  { %v766_v2 = vadd.f32 %v765_v1, %v1457_v7  ;;  %1169 = vmatpush3.bf16.msra.mxu1 %v1166_v60  ;;  %v794_v3 = vsel %vm778_vm15, %v756_v58, %v786_v14  ;;  %1124 = vmatprep.mubr.msk.f32.mxu1 %vm60_vm1, %v1428_v40  ;;  %v360_v40 = vpop.permute.xlu1 %359 }
 0x1c5   :  { %vm781_vm0 = vcmp.ge.f32.partialorder %v771_v63, 0.0  ;;  %v789_v4 = vmul.f32 0.01, %v771_v63  ;;  %v1170_v5 = vpack.c.bf16 %v795_v62, %v794_v3 }
 0x1c6   :  { %vm780_vm2 = vcmp.ge.f32.partialorder %v766_v2, 0.0  ;;  %v788_v12 = vmul.f32 0.01, %v766_v2 }
 0x1c7   :  { %1171 = vmatprep.subr.bf16.mxu1 %v1170_v5  ;;  %v797_v16 = vsel %vm781_vm0, %v771_v63, %v789_v4 }
 0x1c8   :  { %1173 = vmatpush3.bf16.msra.mxu1 %v1170_v5  ;;  %v796_v17 = vsel %vm780_vm2, %v766_v2, %v788_v12  ;;  %v364_v6 = vpop.permute.xlu1 %363 }
 0x1c9   :  { %v1174_v18 = vpack.c.bf16 %v797_v16, %v796_v17 }
 0x1cb   :  { %1175 = vmatprep.subr.bf16.mxu1 %v1174_v18 }
 0x1cc   :  { %1177 = vmatpush3.bf16.msra.mxu1 %v1174_v18 }
 0x1cf   :  { %1125 = vmatmul.mubr.msk.f32.vlgmr.msra.gmra.mrb[4].mxu1 %vm60_vm1, %v347_v50 }
 0x1d0   :  { %1127 = vmatprep.mubr.msk.f32.mxu1 %vm60_vm1, %v348_v9 }
 0x1d3   :  { %1128 = vmatmul.mubr.msk.f32.gmra.mrb[6].mxu1 %vm60_vm1, %v349_v11 }
 0x292   :  { %v1084_v21 = vpop.f32.mrb[0].mxu1 }
 0x293   :  { %v450_v22 = vadd.f32 %v1084_v21, %v356_v20  ;;  %v444_v7 = vpop.f32.mrb[1].mxu1 }
 0x294   :  { %v445_v8 = vadd.f32 %v444_v7, %v352_v19 }
 0x295   :  { %v464_v10 = vadd.f32 %v450_v22, %v1364_v23 }
 0x296   :  { %v463_v29 = vadd.f32 %v445_v8, %v1370_v27  ;;  %v1087_v32 = vpop.f32.mrb[2].mxu1 }
 0x297   :  { %v468_v33 = vsel %vm60_vm1, %v464_v10, 0.0  ;;  %v460_v34 = vadd.f32 %v1087_v32, %v364_v6  ;;  %v454_v35 = vpop.f32.mrb[3].mxu1 }
 0x298   :  { %v467_v36 = vsel %vm60_vm1, %v463_v29, 0.0  ;;  %v455_v37 = vadd.f32 %v454_v35, %v360_v40 }
 0x299   :  { %v469_v28 = vadd.f32 %v468_v33, %v467_v36  ;;  %v466_v25 = vadd.f32 %v460_v34, %v1366_v24  ;;  %v515_v33 = vpop.permute.xlu1 %514 }
 0x29a   :  { %v465_v30 = vadd.f32 %v455_v37, %v1368_v26 }
 0x29b   :  { %v472_v23 = vsel %vm60_vm1, %v466_v25, 0.0 }
 0x29c   :  { %v470_v31 = vsel %vm60_vm1, %v465_v30, 0.0 }
 0x29d   :  { %v471_v44 = vadd.f32 %v470_v31, %v469_v28 }
 0x29f   :  { %v473_v45 = vadd.f32 %v472_v23, %v471_v44 }
 0x2a1   :  { %v474_v27 = vrot.slane %v473_v45, 4 }
 0x2a2   :  { %v1126_v41 = vpop.f32.mrb[4].mxu1 }
 0x2a3   :  { %v475_v46 = vadd.f32 %v474_v27, %v473_v45  ;;  %v886_v47 = vadd.f32 %v1126_v41, %v356_v20  ;;  %v880_v15 = vpop.f32.mrb[5].mxu1 }
 0x2a4   :  { %v881_v48 = vadd.f32 %v880_v15, %v352_v19 }
 0x2a5   :  { %v476_v49 = vrot.slane %v475_v46, 2  ;;  %v900_v50 = vadd.f32 %v886_v47, %v1378_v39 }
 0x2a6   :  { %v899_v51 = vadd.f32 %v881_v48, %v1376_v38  ;;  %v1129_v24 = vpop.f32.mrb[6].mxu1 }
 0x2a7   :  { %v477_v53 = vadd.f32 %v476_v49, %v475_v46  ;;  %v904_v26 = vsel %vm60_vm1, %v900_v50, 0.0  ;;  %v896_v55 = vadd.f32 %v1129_v24, %v364_v6  ;;  %v890_v9 = vpop.f32.mrb[7].mxu1  ;;  %v519_v46 = vpop.permute.xlu1 %518 }
 0x2a8   :  { %v903_v52 = vsel %vm60_vm1, %v899_v51, 0.0  ;;  %v891_v56 = vadd.f32 %v890_v9, %v360_v40 }
 0x2a9   :  { %v478_v57 = vrot.slane %v477_v53, 1  ;;  %v905_v54 = vadd.f32 %v904_v26, %v903_v52  ;;  %v902_v0 = vadd.f32 %v896_v55, %v1380_v42  ;;  %v511_v26 = vpop.permute.xlu0 %510 }
 0x2aa   :  { %v901_v58 = vadd.f32 %v891_v56, %v1382_v43 }
 0x2ab   :  { %v479_v11 = vadd.f32 %v478_v57, %v477_v53  ;;  %v908_v59 = vsel %vm60_vm1, %v902_v0, 0.0  ;;  %v531_v53 = vpop.permute.xlu1 %530 }
 0x2ac   :  { %v906_v39 = vsel %vm60_vm1, %v901_v58, 0.0 }
 0x2ad   :  { %v480_v13 = vmul.f32 0.03125, %v479_v11  ;;  %v907_v38 = vadd.f32 %v906_v39, %v905_v54  ;;  %v523_v57 = vpop.permute.xlu0 %522 }
 0x2af   :  { %v483_v60 = vsub.f32 %v465_v30, %v480_v13  ;;  %v484_v14 = vsub.f32 %v466_v25, %v480_v13  ;;  %v909_v61 = vadd.f32 %v908_v59, %v907_v38  ;;  %v481_v63 = vsub.f32 %v463_v29, %v480_v13  ;;  %v539_v56 = vpop.permute.xlu1 %538 }
 0x2b0   :  { %v482_v1 = vsub.f32 %v464_v10, %v480_v13 }
 0x2b1   :  { %v910_v62 = vrot.slane %v909_v61, 4  ;;  %v485_v2 = vmul.f32 %v481_v63, %v481_v63  ;;  %v487_v3 = vmul.f32 %v483_v60, %v483_v60  ;;  %v488_v43 = vmul.f32 %v484_v14, %v484_v14 }
 0x2b2   :  { %v486_v4 = vmul.f32 %v482_v1, %v482_v1 }
 0x2b3   :  { %v911_v5 = vadd.f32 %v910_v62, %v909_v61  ;;  %v489_v42 = vsel %vm60_vm1, %v485_v2, 0.0  ;;  %v492_v18 = vsel %vm60_vm1, %v487_v3, 0.0  ;;  %v494_v20 = vsel %vm60_vm1, %v488_v43, 0.0  ;;  %v543_v61 = vpop.permute.xlu1 %542  ;;  %v535_v62 = vpop.permute.xlu0 %534 }
 0x2b4   :  { %v490_v12 = vsel %vm60_vm1, %v486_v4, 0.0 }
 0x2b5   :  { %v912_v16 = vrot.slane %v911_v5, 2  ;;  %v491_v17 = vadd.f32 %v490_v12, %v489_v42 }
 0x2b7   :  { %v913_v19 = vadd.f32 %v912_v16, %v911_v5  ;;  %v493_v40 = vadd.f32 %v492_v18, %v491_v17 }
 0x2b9   :  { %v914_v21 = vrot.slane %v913_v19, 1  ;;  %v495_v22 = vadd.f32 %v494_v20, %v493_v40 }
 0x2bb   :  { %v915_v7 = vadd.f32 %v914_v21, %v913_v19  ;;  %v496_v8 = vrot.slane %v495_v22, 4 }
 0x2bd   :  { %v916_v6 = vmul.f32 0.03125, %v915_v7  ;;  %v497_v10 = vadd.f32 %v496_v8, %v495_v22 }
 0x2bf   :  { %v919_v29 = vsub.f32 %v901_v58, %v916_v6  ;;  %v920_v32 = vsub.f32 %v902_v0, %v916_v6  ;;  %v498_v34 = vrot.slane %v497_v10, 2  ;;  %v917_v35 = vsub.f32 %v899_v51, %v916_v6 }
 0x2c0   :  { %v918_v36 = vsub.f32 %v900_v50, %v916_v6 }
 0x2c1   :  { %v499_v37 = vadd.f32 %v498_v34, %v497_v10  ;;  %v921_v28 = vmul.f32 %v917_v35, %v917_v35  ;;  %v923_v25 = vmul.f32 %v919_v29, %v919_v29  ;;  %v924_v23 = vmul.f32 %v920_v32, %v920_v32 }
 0x2c2   :  { %v922_v30 = vmul.f32 %v918_v36, %v918_v36 }
 0x2c3   :  { %v500_v31 = vrot.slane %v499_v37, 1  ;;  %v925_v44 = vsel %vm60_vm1, %v921_v28, 0.0  ;;  %v928_v47 = vsel %vm60_vm1, %v923_v25, 0.0  ;;  %v930_v49 = vsel %vm60_vm1, %v924_v23, 0.0 }
 0x2c4   :  { %v926_v45 = vsel %vm60_vm1, %v922_v30, 0.0 }
 0x2c5   :  { %v501_v27 = vadd.f32 %v500_v31, %v499_v37  ;;  %v927_v41 = vadd.f32 %v926_v45, %v925_v44 }
 0x2c7   :  { %v502_v15 = vmul.f32 0.03125, %v501_v27  ;;  %v929_v48 = vadd.f32 %v928_v47, %v927_v41 }
 0x2c9   :  { %v503_v50 = vadd.f32 1e-05, %v502_v15  ;;  %v931_v51 = vadd.f32 %v930_v49, %v929_v48 }
 0x2cb   :  { %1205 = vrsqrt.f32 %v503_v50  ;;  %v932_v24 = vrot.slane %v931_v51, 4 }
 0x2cd   :  { %v933_v55 = vadd.f32 %v932_v24, %v931_v51 }
 0x2cf   :  { %v934_v9 = vrot.slane %v933_v55, 2 }
 0x2d1   :  { %v935_v52 = vadd.f32 %v934_v9, %v933_v55 }
 0x2d3   :  { %v936_v54 = vrot.slane %v935_v52, 1 }
 0x2d5   :  { %v1206_v0 = vpop.eup %1205  ;;  %v937_v58 = vadd.f32 %v936_v54, %v935_v52 }
 0x2d6   :  { %v506_v11 = vmul.f32 %v1206_v0, %v482_v1  ;;  %v507_v39 = vmul.f32 %v1206_v0, %v483_v60  ;;  %v505_v13 = vmul.f32 %v1206_v0, %v481_v63  ;;  %v508_v38 = vmul.f32 %v1206_v0, %v484_v14 }
 0x2d7   :  { %v938_v59 = vmul.f32 0.03125, %v937_v58 }
 0x2d8   :  { %v526_v2 = vmul.f32 %v515_v33, %v506_v11  ;;  %v527_v3 = vmul.f32 %v519_v46, %v507_v39  ;;  %v525_v4 = vmul.f32 %v511_v26, %v505_v13  ;;  %v528_v5 = vmul.f32 %v523_v57, %v508_v38 }
 0x2d9   :  { %v939_v42 = vadd.f32 1e-05, %v938_v59 }
 0x2da   :  { %v545_v43 = vadd.f32 %v531_v53, %v525_v4  ;;  %v547_v12 = vadd.f32 %v539_v56, %v527_v3  ;;  %v548_v16 = vadd.f32 %v543_v61, %v528_v5  ;;  %v546_v17 = vadd.f32 %v535_v62, %v526_v2 }
 0x2db   :  { %1207 = vrsqrt.f32 %v939_v42 }
 0x2dc   :  { %549 = vst.msk [vmem:[%s1543_s5] sm:$0xff] %vm60_vm1, %v545_v43  ;;  %551 = vst.msk [vmem:[%s1543_s5 + $0x10] sm:$0xff] %vm60_vm1, %v547_v12 }
 0x2dd   :  { %552 = vst.msk [vmem:[%s1543_s5 + $0x18] sm:$0xff] %vm60_vm1, %v548_v16  ;;  %550 = vst.msk [vmem:[%s1543_s5 + $0x8] sm:$0xff] %vm60_vm1, %v546_v17 }
 0x2e5   :  { %v1208_v60 = vpop.eup %1207 }
 0x2e6   :  { %v942_v14 = vmul.f32 %v1208_v60, %v918_v36  ;;  %v943_v63 = vmul.f32 %v1208_v60, %v919_v29  ;;  %v941_v1 = vmul.f32 %v1208_v60, %v917_v35  ;;  %v944_v18 = vmul.f32 %v1208_v60, %v920_v32 }
 0x2e8   :  { %v946_v19 = vmul.f32 %v942_v14, %v515_v33  ;;  %v947_v40 = vmul.f32 %v943_v63, %v519_v46  ;;  %v945_v20 = vmul.f32 %v941_v1, %v511_v26  ;;  %v948_v21 = vmul.f32 %v944_v18, %v523_v57 }
 0x2ea   :  { %v949_v22 = vadd.f32 %v945_v20, %v531_v53  ;;  %v951_v7 = vadd.f32 %v947_v40, %v539_v56  ;;  %v952_v8 = vadd.f32 %v948_v21, %v543_v61  ;;  %v950_v6 = vadd.f32 %v946_v19, %v535_v62 }
 0x2ec   :  { %994 = vst.msk [vmem:[%s1543_s5 + $0x20] sm:$0xff] %vm60_vm1, %v949_v22  ;;  %996 = vst.msk [vmem:[%s1543_s5 + $0x30] sm:$0xff] %vm60_vm1, %v951_v7 }
 0x2ed   :  { %997 = vst.msk [vmem:[%s1543_s5 + $0x38] sm:$0xff] %vm60_vm1, %v952_v8  ;;  %995 = vst.msk [vmem:[%s1543_s5 + $0x28] sm:$0xff] %vm60_vm1, %v950_v6 }

// kernel: _forward_impl.1
= control target key start
LH: loop header
LB: loop body
LE: loop exit
PB: predicated region body
PF: predicated region fallthrough
CT: control target
= control target key end

     0   :  { %v1209_v0 = vmov 0   ;;  %v1210_v10 = vmov 2   ;;  %v1211_v12 = vmov 3   ;;  %vm192_vm0 = vcmask 261120   ;;  %s1538_s1 = inlined_call_operand.vmem [shape: f32[2,32,1], index: 1, kind: input, shape index: {}]   ;;  %s1539_s4 = inlined_call_operand.vmem [shape: f32[64,6], index: 4, kind: input, shape index: {}]   ;;  %s1540_s2 = inlined_call_operand.vmem [shape: f32[64,32], index: 2, kind: input, shape index: {}]   ;;  %s1541_s0 = inlined_call_operand.vmem [shape: f32[2,32,64], index: 0, kind: input, shape index: {}, may-alias: {0,5}]   ;;  %s1542_s3 = inlined_call_operand.vmem [shape: f32[32,64], index: 3, kind: input, shape index: {}]   ;;  %s1543_s5 = inlined_call_operand.vmem [shape: f32[2,32,64], index: 5, kind: output, shape index: {}, may-alias: {0,5}]  }
   0x1   :  { %1185 = vset.pattern.permute.xlu1 %v1209_v0  ;;  %1184 = vset.pattern.permute.xlu0 %v1209_v0  ;;  %v34_v1 = vld [vmem:[%s1538_s1 + $0x10] sm:$0xff]  ;;  %v32_v2 = vld [vmem:[%s1538_s1] sm:$0xff]  ;;  %v35_v3 = vld [vmem:[%s1538_s1 + $0x18] sm:$0xff]  ;;  %vm60_vm1 = vcmask 523264  }
   0x2   :  { %48 = vperm.xlu1 %1185, %v34_v1   ;;  %38 = vperm.xlu0 %1184, %v32_v2   ;;  %v33_v4 = vld [vmem:[%s1538_s1 + $0x8] sm:$0xff]  ;;  %v978_v6 = vld [vmem:[%s1538_s1 + $0x20] sm:$0xff]  ;;  %v981_v7 = vld [vmem:[%s1538_s1 + $0x38] sm:$0xff] }
   0x3   :  { %v979_v5 = vld [vmem:[%s1538_s1 + $0x28] sm:$0xff]  ;;  %v980_v8 = vld [vmem:[%s1538_s1 + $0x30] sm:$0xff]  ;;  %v1279_v11 = vld [vmem:[%s1539_s4] sm:$0xff] }
   0x4   :  { %v1274_v9 = vld [vmem:[%s1539_s4 + $0x8] sm:$0xff]  ;;  %v1288_v13 = vld [vmem:[%s1539_s4 + $0x10] sm:$0xff]  ;;  %v1295_v14 = vld [vmem:[%s1539_s4 + $0x18] sm:$0xff] }
   0x5   :  { %v1308_v15 = vld [vmem:[%s1540_s2] sm:$0xff]  ;;  %v25_v17 = vld [vmem:[%s1539_s4 + $0x28] sm:$0xff]  ;;  %v26_v18 = vld [vmem:[%s1539_s4 + $0x30] sm:$0xff] }
   0x6   :  { %53 = vperm.xlu1 %1185, %v35_v3   ;;  %43 = vperm.xlu0 %1184, %v33_v4   ;;  %v24_v16 = vld [vmem:[%s1539_s4 + $0x20] sm:$0xff]  ;;  %v27_v19 = vld [vmem:[%s1539_s4 + $0x38] sm:$0xff]  ;;  %v30_v23 = vld [vmem:[%s1541_s0 + $0x10] sm:$0xff] }
   0x7   :  { %1054 = vmatprep.mubr.msk.f32.mxu0 %vm192_vm0, %v1308_v15  ;;  %v28_v22 = vld [vmem:[%s1541_s0] sm:$0xff]  ;;  %v29_v24 = vld [vmem:[%s1541_s0 + $0x8] sm:$0xff]  ;;  %v31_v27 = vld [vmem:[%s1541_s0 + $0x18] sm:$0xff] }
   0x8   :  { %v975_v31 = vld [vmem:[%s1541_s0 + $0x28] sm:$0xff]  ;;  %v974_v32 = vld [vmem:[%s1541_s0 + $0x20] sm:$0xff]  ;;  %v977_v43 = vld [vmem:[%s1541_s0 + $0x38] sm:$0xff] }
   0x9   :  { %v976_v44 = vld [vmem:[%s1541_s0 + $0x30] sm:$0xff] }
   0xa   :  { %570 = vperm.xlu1 %1185, %v979_v5   ;;  %565 = vperm.xlu0 %1184, %v978_v6  }
   0xe   :  { %580 = vperm.xlu1 %1185, %v981_v7   ;;  %575 = vperm.xlu0 %1184, %v980_v8  }
  0x12   :  { %1187 = vset.pattern.permute.xlu1 %v1210_v10  ;;  %1186 = vset.pattern.permute.xlu0 %v1210_v10 }
  0x13   :  { %111 = vperm.xlu1 %1187, %v1274_v9   ;;  %106 = vperm.xlu0 %1186, %v1279_v11  }
  0x17   :  { %1188 = vset.pattern.permute.xlu1 %v1211_v12  ;;  %1189 = vset.pattern.permute.xlu0 %v1211_v12 }
  0x18   :  { %129 = vperm.xlu1 %1188, %v1279_v11   ;;  %133 = vperm.xlu0 %1189, %v1274_v9  }
  0x1c   :  { %1190 = vset.pattern.permute.xlu1 %v1210_v10  ;;  %137 = vperm.xlu0 %1189, %v1288_v13  }
  0x1d   :  { %116 = vperm.xlu1 %1190, %v1288_v13  }
  0x20   :  { %1192 = vset.pattern.permute.xlu0 %v1209_v0 }
  0x21   :  { %121 = vperm.xlu1 %1190, %v1295_v14   ;;  %157 = vperm.xlu0 %1192, %v1279_v11  }
  0x25   :  { %1191 = vset.pattern.permute.xlu1 %v1211_v12  ;;  %169 = vperm.xlu0 %1192, %v1295_v14  }
  0x26   :  { %141 = vperm.xlu1 %1191, %v1295_v14  }
  0x29   :  { %179 = vperm.xlu0 %1192, %v25_v17  }
  0x2a   :  { %1193 = vset.pattern.permute.xlu1 %v1209_v0 }
  0x2b   :  { %161 = vperm.xlu1 %1193, %v1274_v9  }
  0x2d   :  { %189 = vperm.xlu0 %1192, %v27_v19  }
  0x2f   :  { %165 = vperm.xlu1 %1193, %v1288_v13  }
  0x33   :  { %174 = vperm.xlu1 %1193, %v24_v16  }
  0x37   :  { %184 = vperm.xlu1 %1193, %v26_v18  }
  0x81   :  { %v49_v20 = vpop.permute.xlu1 %48  ;;  %v39_v21 = vpop.permute.xlu0 %38 }
  0x82   :  { %v56_v25 = vadd.f32 %v39_v21, %v28_v22  ;;  %v58_v29 = vadd.f32 %v49_v20, %v30_v23 }
  0x84   :  { %v61_v33 = vsel %vm60_vm1, %v56_v25, 0.0  ;;  %v64_v39 = vsel %vm60_vm1, %v58_v29, 0.0 }
  0x85   :  { %v54_v26 = vpop.permute.xlu1 %53  ;;  %v44_v28 = vpop.permute.xlu0 %43 }
  0x86   :  { %v57_v30 = vadd.f32 %v44_v28, %v29_v24  ;;  %v59_v34 = vadd.f32 %v54_v26, %v31_v27 }
  0x88   :  { %v62_v35 = vsel %vm60_vm1, %v57_v30, 0.0  ;;  %v66_v45 = vsel %vm60_vm1, %v59_v34, 0.0 }
  0x89   :  { %v63_v36 = vadd.f32 %v62_v35, %v61_v33  ;;  %v571_v37 = vpop.permute.xlu1 %570  ;;  %v566_v38 = vpop.permute.xlu0 %565 }
  0x8a   :  { %v584_v40 = vadd.f32 %v975_v31, %v571_v37  ;;  %v583_v41 = vadd.f32 %v974_v32, %v566_v38 }
  0x8b   :  { %v65_v42 = vadd.f32 %v64_v39, %v63_v36 }
  0x8c   :  { %v588_v46 = vsel %vm60_vm1, %v584_v40, 0.0  ;;  %v587_v47 = vsel %vm60_vm1, %v583_v41, 0.0 }
  0x8d   :  { %v67_v48 = vadd.f32 %v66_v45, %v65_v42  ;;  %v581_v49 = vpop.permute.xlu1 %580  ;;  %v576_v50 = vpop.permute.xlu0 %575  ;;  %v589_v54 = vadd.f32 %v588_v46, %v587_v47 }
  0x8e   :  { %v586_v51 = vadd.f32 %v977_v43, %v581_v49  ;;  %v585_v52 = vadd.f32 %v976_v44, %v576_v50 }
  0x8f   :  { %v68_v53 = vrot.slane %v67_v48, 4 }
  0x90   :  { %v590_v55 = vsel %vm60_vm1, %v585_v52, 0.0  ;;  %v592_v58 = vsel %vm60_vm1, %v586_v51, 0.0 }
  0x91   :  { %v69_v56 = vadd.f32 %v68_v53, %v67_v48  ;;  %v591_v57 = vadd.f32 %v590_v55, %v589_v54 }
  0x93   :  { %v70_v59 = vrot.slane %v69_v56, 2  ;;  %v593_v60 = vadd.f32 %v592_v58, %v591_v57 }
  0x95   :  { %v71_v61 = vadd.f32 %v70_v59, %v69_v56  ;;  %v594_v62 = vrot.slane %v593_v60, 4 }
  0x97   :  { %v72_v63 = vrot.slane %v71_v61, 1  ;;  %v595_v1 = vadd.f32 %v594_v62, %v593_v60  ;;  %v107_v60 = vpop.permute.xlu0 %106 }
  0x99   :  { %v73_v2 = vadd.f32 %v72_v63, %v71_v61  ;;  %v596_v3 = vrot.slane %v595_v1, 2 }
  0x9b   :  { %v75_v4 = vmul.f32 0.03125, %v73_v2  ;;  %v597_v5 = vadd.f32 %v596_v3, %v595_v1  ;;  %v134_v2 = vpop.permute.xlu0 %133 }
  0x9d   :  { %v76_v6 = vsub.f32 %v56_v25, %v75_v4  ;;  %v77_v7 = vsub.f32 %v57_v30, %v75_v4  ;;  %v78_v8 = vsub.f32 %v58_v29, %v75_v4  ;;  %v79_v10 = vsub.f32 %v59_v34, %v75_v4 }
  0x9e   :  { %v598_v12 = vrot.slane %v597_v5, 1 }
  0x9f   :  { %v80_v16 = vmul.f32 %v76_v6, %v76_v6  ;;  %v81_v17 = vmul.f32 %v77_v7, %v77_v7  ;;  %v82_v18 = vmul.f32 %v78_v8, %v78_v8  ;;  %v83_v20 = vmul.f32 %v79_v10, %v79_v10 }
  0xa0   :  { %v599_v19 = vadd.f32 %v598_v12, %v597_v5 }
  0xa1   :  { %v84_v21 = vsel %vm60_vm1, %v80_v16, 0.0  ;;  %v85_v22 = vsel %vm60_vm1, %v81_v17, 0.0  ;;  %v87_v26 = vsel %vm60_vm1, %v82_v18, 0.0  ;;  %v89_v29 = vsel %vm60_vm1, %v83_v20, 0.0  ;;  %v138_v18 = vpop.permute.xlu0 %137 }
  0xa2   :  { %v86_v23 = vadd.f32 %v85_v22, %v84_v21  ;;  %v600_v24 = vmul.f32 0.03125, %v599_v19 }
  0xa4   :  { %v88_v27 = vadd.f32 %v87_v26, %v86_v23  ;;  %v603_v28 = vsub.f32 %v585_v52, %v600_v24  ;;  %v601_v25 = vsub.f32 %v583_v41, %v600_v24  ;;  %v604_v30 = vsub.f32 %v586_v51, %v600_v24  ;;  %v112_v41 = vpop.permute.xlu1 %111 }
  0xa5   :  { %v602_v31 = vsub.f32 %v584_v40, %v600_v24 }
  0xa6   :  { %v90_v32 = vadd.f32 %v89_v29, %v88_v27  ;;  %v605_v33 = vmul.f32 %v601_v25, %v601_v25  ;;  %v607_v34 = vmul.f32 %v603_v28, %v603_v28  ;;  %v608_v38 = vmul.f32 %v604_v30, %v604_v30 }
  0xa7   :  { %v606_v35 = vmul.f32 %v602_v31, %v602_v31 }
  0xa8   :  { %v91_v36 = vrot.slane %v90_v32, 4  ;;  %v609_v37 = vsel %vm60_vm1, %v605_v33, 0.0  ;;  %v612_v44 = vsel %vm60_vm1, %v607_v34, 0.0  ;;  %v614_v47 = vsel %vm60_vm1, %v608_v38, 0.0  ;;  %v130_v53 = vpop.permute.xlu1 %129 }
  0xa9   :  { %v610_v39 = vsel %vm60_vm1, %v606_v35, 0.0 }
  0xaa   :  { %v92_v42 = vadd.f32 %v91_v36, %v90_v32  ;;  %v611_v43 = vadd.f32 %v610_v39, %v609_v37 }
  0xac   :  { %v93_v45 = vrot.slane %v92_v42, 2  ;;  %v613_v46 = vadd.f32 %v612_v44, %v611_v43  ;;  %v117_v59 = vpop.permute.xlu1 %116  ;;  %v151_v44 = vld [vmem:[%s1540_s2 + $0x18] sm:$0xff] }
  0xae   :  { %v94_v40 = vadd.f32 %v93_v45, %v92_v42  ;;  %v615_v48 = vadd.f32 %v614_v47, %v613_v46  ;;  %v152_v45 = vld [vmem:[%s1540_s2 + $0x20] sm:$0xff]  ;;  %v154_v46 = vld [vmem:[%s1540_s2 + $0x30] sm:$0xff]  ;;  %v155_v47 = vld [vmem:[%s1540_s2 + $0x38] sm:$0xff] }
  0xb0   :  { %v95_v49 = vrot.slane %v94_v40, 1  ;;  %v616_v50 = vrot.slane %v615_v48, 4  ;;  %v122_v1 = vpop.permute.xlu1 %121 }
  0xb2   :  { %v96_v51 = vadd.f32 %v95_v49, %v94_v40  ;;  %v617_v52 = vadd.f32 %v616_v50, %v615_v48  ;;  %v1428_v40 = vld [vmem:[%s1542_s3] sm:$0xff]  ;;  %v1213_v48 = vmov 4   ;;  %v1214_v49 = vmov 5   ;;  %v158_v50 = vpop.permute.xlu0 %157 }
  0xb3   :  { %1082 = vmatprep.mubr.msk.f32.mxu1 %vm60_vm1, %v1428_v40 }
  0xb4   :  { %v97_v54 = vmul.f32 0.03125, %v96_v51  ;;  %v618_v55 = vrot.slane %v617_v52, 2  ;;  %v142_v17 = vpop.permute.xlu1 %141 }
  0xb6   :  { %v98_v56 = vadd.f32 1e-05, %v97_v54  ;;  %v619_v57 = vadd.f32 %v618_v55, %v617_v52  ;;  %v1445_v52 = vpop.permute.xlu0 %169 }
  0xb8   :  { %1201 = vrsqrt.f32 %v98_v56  ;;  %v620_v58 = vrot.slane %v619_v57, 1  ;;  %v162_v51 = vpop.permute.xlu1 %161 }
  0xba   :  { %v621_v61 = vadd.f32 %v620_v58, %v619_v57 }
  0xbc   :  { %v622_v62 = vmul.f32 0.03125, %v621_v61  ;;  %v1447_v54 = vpop.permute.xlu1 %165 }
  0xbe   :  { %v623_v63 = vadd.f32 1e-05, %v622_v62 }
  0xc0   :  { %1203 = vrsqrt.f32 %v623_v63  ;;  %v1453_v62 = vpop.permute.xlu1 %174 }
  0xc2   :  { %v1202_v3 = vpop.eup %1201 }
  0xc3   :  { %v101_v4 = vmul.f32 %v1202_v3, %v77_v7  ;;  %v102_v5 = vmul.f32 %v1202_v3, %v78_v8  ;;  %v100_v12 = vmul.f32 %v1202_v3, %v76_v6  ;;  %v103_v16 = vmul.f32 %v1202_v3, %v79_v10 }
  0xc5   :  { %v125_v19 = vmul.f32 %v112_v41, %v101_v4  ;;  %v126_v20 = vmul.f32 %v117_v59, %v102_v5  ;;  %v124_v21 = vmul.f32 %v107_v60, %v100_v12  ;;  %v127_v22 = vmul.f32 %v122_v1, %v103_v16 }
  0xc7   :  { %v1364_v23 = vadd.f32 %v134_v2, %v125_v19  ;;  %v1366_v24 = vadd.f32 %v142_v17, %v127_v22  ;;  %v1368_v26 = vadd.f32 %v138_v18, %v126_v20  ;;  %v1370_v27 = vadd.f32 %v130_v53, %v124_v21 }
  0xc9   :  { %v1130_v7 = vpack.c.bf16 %v1364_v23, %v1370_v27  ;;  %v1134_v6 = vpack.c.bf16 %v1366_v24, %v1368_v26 }
  0xca   :  { %v1204_v8 = vpop.eup %1203 }
  0xcb   :  { %v626_v10 = vmul.f32 %v1204_v8, %v602_v31  ;;  %v627_v29 = vmul.f32 %v1204_v8, %v603_v28  ;;  %v625_v32 = vmul.f32 %v1204_v8, %v601_v25  ;;  %v628_v33 = vmul.f32 %v1204_v8, %v604_v30  ;;  %1131 = vmatprep.subr.bf16.mxu0 %v1130_v7  ;;  %v149_v28 = vld [vmem:[%s1540_s2 + $0x8] sm:$0xff]  ;;  %v150_v30 = vld [vmem:[%s1540_s2 + $0x10] sm:$0xff] }
  0xcc   :  { %1133 = vmatpush3.bf16.msra.mxu0 %v1130_v7  ;;  %v1457_v7 = vpop.permute.xlu1 %184 }
  0xcd   :  { %v630_v34 = vmul.f32 %v626_v10, %v112_v41  ;;  %v631_v35 = vmul.f32 %v627_v29, %v117_v59  ;;  %v629_v36 = vmul.f32 %v625_v32, %v107_v60  ;;  %v632_v37 = vmul.f32 %v628_v33, %v122_v1  ;;  %1135 = vmatprep.subr.bf16.mxu0 %v1134_v6  ;;  %v153_v41 = vld [vmem:[%s1540_s2 + $0x28] sm:$0xff] }
  0xcf   :  { %v1376_v38 = vadd.f32 %v629_v36, %v130_v53  ;;  %v1378_v39 = vadd.f32 %v630_v34, %v134_v2  ;;  %v1380_v42 = vadd.f32 %v632_v37, %v142_v17  ;;  %v1382_v43 = vadd.f32 %v631_v35, %v138_v18 }
  0xd0   :  { %1137 = vmatpush3.bf16.msra.mxu0 %v1134_v6 }
  0xd1   :  { %v1154_v25 = vpack.c.bf16 %v1378_v39, %v1376_v38  ;;  %v1158_v31 = vpack.c.bf16 %v1380_v42, %v1382_v43 }
  0xd3   :  { %1155 = vmatprep.subr.bf16.mxu0 %v1154_v25  ;;  %1055 = vmatmul.mubr.msk.f32.vlgmr.msra.gmra.mrb[0].mxu0 %vm192_vm0, %v149_v28 }
  0xd4   :  { %1157 = vmatpush3.bf16.msra.mxu0 %v1154_v25  ;;  %1057 = vmatprep.mubr.msk.f32.mxu0 %vm192_vm0, %v150_v30 }
  0xd5   :  { %1159 = vmatprep.subr.bf16.mxu0 %v1158_v31 }
  0xd7   :  { %1058 = vmatmul.mubr.msk.f32.gmra.mrb[2].mxu0 %vm192_vm0, %v151_v44 }
  0xd8   :  { %1161 = vmatpush3.bf16.msra.mxu0 %v1158_v31  ;;  %1060 = vmatprep.mubr.msk.f32.mxu0 %vm192_vm0, %v152_v45 }
  0xdb   :  { %1061 = vmatmul.mubr.msk.f32.gmra.mrb[4].mxu0 %vm192_vm0, %v153_v41 }
  0xdc   :  { %1063 = vmatprep.mubr.msk.f32.mxu0 %vm192_vm0, %v154_v46 }
  0xdf   :  { %1064 = vmatmul.mubr.msk.f32.gmra.mrb[6].mxu0 %vm192_vm0, %v155_v47 }
  0xe0   :  { %1096 = vmatprep.mubr.msk.f32.mxu0 %vm192_vm0, %v1308_v15  ;;  %v1212_v15 = vmov 1  }
  0xe1   :  { %1194 = vset.pattern.permute.xlu1 %v1212_v15  ;;  %1195 = vset.pattern.permute.xlu0 %v1212_v15 }
  0xe2   :  { %351 = vperm.xlu1 %1194, %v1279_v11   ;;  %355 = vperm.xlu0 %1195, %v1274_v9  }
  0xe3   :  { %1097 = vmatmul.mubr.msk.f32.vlgmr.msra.gmra.mrb[8].mxu0 %vm192_vm0, %v149_v28 }
  0xe4   :  { %1099 = vmatprep.mubr.msk.f32.mxu0 %vm192_vm0, %v150_v30 }
  0xe6   :  { %359 = vperm.xlu1 %1194, %v1288_v13   ;;  %1196 = vset.pattern.permute.xlu0 %v1213_v48 }
  0xe7   :  { %1100 = vmatmul.mubr.msk.f32.gmra.mrb[10].mxu0 %vm192_vm0, %v151_v44  ;;  %510 = vperm.xlu0 %1196, %v1279_v11  }
  0xe8   :  { %1102 = vmatprep.mubr.msk.f32.mxu0 %vm192_vm0, %v152_v45 }
  0xea   :  { %363 = vperm.xlu1 %1194, %v1295_v14  }
  0xeb   :  { %1103 = vmatmul.mubr.msk.f32.gmra.mrb[12].mxu0 %vm192_vm0, %v153_v41  ;;  %522 = vperm.xlu0 %1196, %v1295_v14  }
  0xec   :  { %1105 = vmatprep.mubr.msk.f32.mxu0 %vm192_vm0, %v154_v46 }
  0xee   :  { %1197 = vset.pattern.permute.xlu1 %v1213_v48 }
  0xef   :  { %1106 = vmatmul.mubr.msk.f32.gmra.mrb[14].mxu0 %vm192_vm0, %v155_v47  ;;  %514 = vperm.xlu1 %1197, %v1274_v9  }
  0xf0   :  { %1199 = vset.pattern.permute.xlu0 %v1214_v49 }
  0xf1   :  { %534 = vperm.xlu0 %1199, %v1274_v9  }
  0xf3   :  { %518 = vperm.xlu1 %1197, %v1288_v13  }
  0xf5   :  { %1200 = vset.pattern.permute.xlu0 %v1209_v0 }
  0xf7   :  { %1198 = vset.pattern.permute.xlu1 %v1214_v49 }
  0xf8   :  { %530 = vperm.xlu1 %1198, %v1279_v11  }
  0xfc   :  { %538 = vperm.xlu1 %1198, %v1288_v13  }
 0x100   :  { %542 = vperm.xlu1 %1198, %v1295_v14   ;;  %v1450_v14 = vpop.permute.xlu0 %179 }
 0x104   :  { %v190_v20 = vpop.permute.xlu0 %189 }
 0x1a6   :  { %v1056_v53 = vpop.f32.mrb[0].mxu0 }
 0x1a7   :  { %v289_v55 = vadd.f32 %v1056_v53, %v162_v51  ;;  %v283_v9 = vpop.f32.mrb[1].mxu0 }
 0x1a8   :  { %v284_v56 = vadd.f32 %v283_v9, %v158_v50  ;;  %v348_v9 = vld [vmem:[%s1542_s3 + $0x10] sm:$0xff] }
 0x1a9   :  { %v331_v57 = vmul.f32 0.01, %v289_v55  ;;  %vm323_vm2 = vcmp.ge.f32.partialorder %v289_v55, 0.0 }
 0x1aa   :  { %v330_v0 = vmul.f32 0.01, %v284_v56  ;;  %v1059_v58 = vpop.f32.mrb[2].mxu0  ;;  %vm322_vm3 = vcmp.ge.f32.partialorder %v284_v56, 0.0 }
 0x1ab   :  { %v299_v11 = vadd.f32 %v1059_v58, %v1445_v52  ;;  %v293_v13 = vpop.f32.mrb[3].mxu0  ;;  %v339_v59 = vsel %vm323_vm2, %v289_v55, %v331_v57 }
 0x1ac   :  { %v294_v60 = vadd.f32 %v293_v13, %v1447_v54  ;;  %v338_v61 = vsel %vm322_vm3, %v284_v56, %v330_v0 }
 0x1ad   :  { %vm325_vm4 = vcmp.ge.f32.partialorder %v299_v11, 0.0  ;;  %v333_v63 = vmul.f32 0.01, %v299_v11  ;;  %v1138_v1 = vpack.c.bf16 %v339_v59, %v338_v61 }
 0x1ae   :  { %vm324_vm5 = vcmp.ge.f32.partialorder %v294_v60, 0.0  ;;  %v332_v2 = vmul.f32 0.01, %v294_v60  ;;  %v1062_v3 = vpop.f32.mrb[4].mxu0 }
 0x1af   :  { %v309_v4 = vadd.f32 %v1062_v3, %v1450_v14  ;;  %v303_v5 = vpop.f32.mrb[5].mxu0  ;;  %1139 = vmatprep.subr.bf16.mxu1 %v1138_v1  ;;  %v341_v12 = vsel %vm325_vm4, %v299_v11, %v333_v63  ;;  %v349_v11 = vld [vmem:[%s1542_s3 + $0x18] sm:$0xff] }
 0x1b0   :  { %v304_v16 = vadd.f32 %v303_v5, %v1453_v62  ;;  %1141 = vmatpush3.bf16.msra.mxu1 %v1138_v1  ;;  %v340_v17 = vsel %vm324_vm5, %v294_v60, %v332_v2 }
 0x1b1   :  { %vm327_vm6 = vcmp.ge.f32.partialorder %v309_v4, 0.0  ;;  %v335_v18 = vmul.f32 0.01, %v309_v4  ;;  %v1142_v19 = vpack.c.bf16 %v341_v12, %v340_v17 }
 0x1b2   :  { %vm326_vm7 = vcmp.ge.f32.partialorder %v304_v16, 0.0  ;;  %v334_v21 = vmul.f32 0.01, %v304_v16  ;;  %v1065_v22 = vpop.f32.mrb[6].mxu0 }
 0x1b3   :  { %v319_v8 = vadd.f32 %v1065_v22, %v190_v20  ;;  %v313_v6 = vpop.f32.mrb[7].mxu0  ;;  %1143 = vmatprep.subr.bf16.mxu1 %v1142_v19  ;;  %v343_v10 = vsel %vm327_vm6, %v309_v4, %v335_v18 }
 0x1b4   :  { %v314_v29 = vadd.f32 %v313_v6, %v1457_v7  ;;  %1145 = vmatpush3.bf16.msra.mxu1 %v1142_v19  ;;  %v342_v32 = vsel %vm326_vm7, %v304_v16, %v334_v21  ;;  %v352_v19 = vpop.permute.xlu1 %351 }
 0x1b5   :  { %vm329_vm8 = vcmp.ge.f32.partialorder %v319_v8, 0.0  ;;  %v337_v33 = vmul.f32 0.01, %v319_v8  ;;  %v1146_v34 = vpack.c.bf16 %v343_v10, %v342_v32 }
 0x1b6   :  { %vm328_vm9 = vcmp.ge.f32.partialorder %v314_v29, 0.0  ;;  %v336_v35 = vmul.f32 0.01, %v314_v29  ;;  %v1098_v36 = vpop.f32.mrb[8].mxu0 }
 0x1b7   :  { %v741_v37 = vadd.f32 %v1098_v36, %v162_v51  ;;  %1147 = vmatprep.subr.bf16.mxu1 %v1146_v34  ;;  %v735_v28 = vpop.f32.mrb[9].mxu0  ;;  %v345_v25 = vsel %vm329_vm8, %v319_v8, %v337_v33 }
 0x1b8   :  { %v736_v30 = vadd.f32 %v735_v28, %v158_v50  ;;  %1149 = vmatpush3.bf16.msra.mxu1 %v1146_v34  ;;  %v344_v31 = vsel %vm328_vm9, %v314_v29, %v336_v35  ;;  %v347_v50 = vld [vmem:[%s1542_s3 + $0x8] sm:$0xff] }
 0x1b9   :  { %vm775_vm10 = vcmp.ge.f32.partialorder %v741_v37, 0.0  ;;  %v783_v44 = vmul.f32 0.01, %v741_v37  ;;  %v1150_v45 = vpack.c.bf16 %v345_v25, %v344_v31 }
 0x1ba   :  { %vm774_vm11 = vcmp.ge.f32.partialorder %v736_v30, 0.0  ;;  %v782_v41 = vmul.f32 0.01, %v736_v30  ;;  %v1101_v46 = vpop.f32.mrb[10].mxu0 }
 0x1bb   :  { %v751_v47 = vadd.f32 %v1101_v46, %v1445_v52  ;;  %1151 = vmatprep.subr.bf16.mxu1 %v1150_v45  ;;  %v745_v15 = vpop.f32.mrb[11].mxu0  ;;  %v791_v48 = vsel %vm775_vm10, %v741_v37, %v783_v44 }
 0x1bc   :  { %v746_v49 = vadd.f32 %v745_v15, %v1447_v54  ;;  %1153 = vmatpush3.bf16.msra.mxu1 %v1150_v45  ;;  %v790_v51 = vsel %vm774_vm11, %v736_v30, %v782_v41 }
 0x1bd   :  { %vm777_vm12 = vcmp.ge.f32.partialorder %v751_v47, 0.0  ;;  %v785_v53 = vmul.f32 0.01, %v751_v47  ;;  %v1162_v55 = vpack.c.bf16 %v791_v48, %v790_v51 }
 0x1be   :  { %vm776_vm13 = vcmp.ge.f32.partialorder %v746_v49, 0.0  ;;  %v784_v52 = vmul.f32 0.01, %v746_v49  ;;  %v1104_v56 = vpop.f32.mrb[12].mxu0 }
 0x1bf   :  { %v761_v57 = vadd.f32 %v1104_v56, %v1450_v14  ;;  %1083 = vmatmul.mubr.msk.f32.vlgmr.msra.gmra.mrb[0].mxu1 %vm60_vm1, %v347_v50  ;;  %v755_v54 = vpop.f32.mrb[13].mxu0  ;;  %1163 = vmatprep.subr.bf16.mxu1 %v1162_v55  ;;  %v793_v0 = vsel %vm777_vm12, %v751_v47, %v785_v53 }
 0x1c0   :  { %v756_v58 = vadd.f32 %v755_v54, %v1453_v62  ;;  %1165 = vmatpush3.bf16.msra.mxu1 %v1162_v55  ;;  %1085 = vmatprep.mubr.msk.f32.mxu1 %vm60_vm1, %v348_v9  ;;  %v792_v13 = vsel %vm776_vm13, %v746_v49, %v784_v52 }
 0x1c1   :  { %vm779_vm14 = vcmp.ge.f32.partialorder %v761_v57, 0.0  ;;  %v787_v59 = vmul.f32 0.01, %v761_v57  ;;  %v1166_v60 = vpack.c.bf16 %v793_v0, %v792_v13 }
 0x1c2   :  { %vm778_vm15 = vcmp.ge.f32.partialorder %v756_v58, 0.0  ;;  %v786_v14 = vmul.f32 0.01, %v756_v58  ;;  %v1107_v61 = vpop.f32.mrb[14].mxu0 }
 0x1c3   :  { %v771_v63 = vadd.f32 %v1107_v61, %v190_v20  ;;  %1086 = vmatmul.mubr.msk.f32.gmra.mrb[2].mxu1 %vm60_vm1, %v349_v11  ;;  %v765_v1 = vpop.f32.mrb[15].mxu0  ;;  %1167 = vmatprep.subr.bf16.mxu1 %v1166_v60  ;;  %v795_v62 = vsel %vm779_vm14, %v761_v57, %v787_v59  ;;  %v356_v20 = vpop.permute.xlu0 %355 }
 0x1c4   :  { %v766_v2 = vadd.f32 %v765_v1, %v1457_v7  ;;  %1169 = vmatpush3.bf16.msra.mxu1 %v1166_v60  ;;  %v794_v3 = vsel %vm778_vm15, %v756_v58, %v786_v14  ;;  %1124 = vmatprep.mubr.msk.f32.mxu1 %vm60_vm1, %v1428_v40  ;;  %v360_v40 = vpop.permute.xlu1 %359 }
 0x1c5   :  { %vm781_vm0 = vcmp.ge.f32.partialorder %v771_v63, 0.0  ;;  %v789_v4 = vmul.f32 0.01, %v771_v63  ;;  %v1170_v5 = vpack.c.bf16 %v795_v62, %v794_v3 }
 0x1c6   :  { %vm780_vm2 = vcmp.ge.f32.partialorder %v766_v2, 0.0  ;;  %v788_v12 = vmul.f32 0.01, %v766_v2 }
 0x1c7   :  { %1171 = vmatprep.subr.bf16.mxu1 %v1170_v5  ;;  %v797_v16 = vsel %vm781_vm0, %v771_v63, %v789_v4 }
 0x1c8   :  { %1173 = vmatpush3.bf16.msra.mxu1 %v1170_v5  ;;  %v796_v17 = vsel %vm780_vm2, %v766_v2, %v788_v12  ;;  %v364_v6 = vpop.permute.xlu1 %363 }
 0x1c9   :  { %v1174_v18 = vpack.c.bf16 %v797_v16, %v796_v17 }
 0x1cb   :  { %1175 = vmatprep.subr.bf16.mxu1 %v1174_v18 }
 0x1cc   :  { %1177 = vmatpush3.bf16.msra.mxu1 %v1174_v18 }
 0x1cf   :  { %1125 = vmatmul.mubr.msk.f32.vlgmr.msra.gmra.mrb[4].mxu1 %vm60_vm1, %v347_v50 }
 0x1d0   :  { %1127 = vmatprep.mubr.msk.f32.mxu1 %vm60_vm1, %v348_v9 }
 0x1d3   :  { %1128 = vmatmul.mubr.msk.f32.gmra.mrb[6].mxu1 %vm60_vm1, %v349_v11 }
 0x292   :  { %v1084_v21 = vpop.f32.mrb[0].mxu1 }
 0x293   :  { %v450_v22 = vadd.f32 %v1084_v21, %v356_v20  ;;  %v444_v7 = vpop.f32.mrb[1].mxu1 }
 0x294   :  { %v445_v8 = vadd.f32 %v444_v7, %v352_v19 }
 0x295   :  { %v464_v10 = vadd.f32 %v450_v22, %v1364_v23 }
 0x296   :  { %v463_v29 = vadd.f32 %v445_v8, %v1370_v27  ;;  %v1087_v32 = vpop.f32.mrb[2].mxu1 }
 0x297   :  { %v468_v33 = vsel %vm60_vm1, %v464_v10, 0.0  ;;  %v460_v34 = vadd.f32 %v1087_v32, %v364_v6  ;;  %v454_v35 = vpop.f32.mrb[3].mxu1 }
 0x298   :  { %v467_v36 = vsel %vm60_vm1, %v463_v29, 0.0  ;;  %v455_v37 = vadd.f32 %v454_v35, %v360_v40 }
 0x299   :  { %v469_v28 = vadd.f32 %v468_v33, %v467_v36  ;;  %v466_v25 = vadd.f32 %v460_v34, %v1366_v24  ;;  %v515_v33 = vpop.permute.xlu1 %514 }
 0x29a   :  { %v465_v30 = vadd.f32 %v455_v37, %v1368_v26 }
 0x29b   :  { %v472_v23 = vsel %vm60_vm1, %v466_v25, 0.0 }
 0x29c   :  { %v470_v31 = vsel %vm60_vm1, %v465_v30, 0.0 }
 0x29d   :  { %v471_v44 = vadd.f32 %v470_v31, %v469_v28 }
 0x29f   :  { %v473_v45 = vadd.f32 %v472_v23, %v471_v44 }
 0x2a1   :  { %v474_v27 = vrot.slane %v473_v45, 4 }
 0x2a2   :  { %v1126_v41 = vpop.f32.mrb[4].mxu1 }
 0x2a3   :  { %v475_v46 = vadd.f32 %v474_v27, %v473_v45  ;;  %v886_v47 = vadd.f32 %v1126_v41, %v356_v20  ;;  %v880_v15 = vpop.f32.mrb[5].mxu1 }
 0x2a4   :  { %v881_v48 = vadd.f32 %v880_v15, %v352_v19 }
 0x2a5   :  { %v476_v49 = vrot.slane %v475_v46, 2  ;;  %v900_v50 = vadd.f32 %v886_v47, %v1378_v39 }
 0x2a6   :  { %v899_v51 = vadd.f32 %v881_v48, %v1376_v38  ;;  %v1129_v24 = vpop.f32.mrb[6].mxu1 }
 0x2a7   :  { %v477_v53 = vadd.f32 %v476_v49, %v475_v46  ;;  %v904_v26 = vsel %vm60_vm1, %v900_v50, 0.0  ;;  %v896_v55 = vadd.f32 %v1129_v24, %v364_v6  ;;  %v890_v9 = vpop.f32.mrb[7].mxu1  ;;  %v519_v46 = vpop.permute.xlu1 %518 }
 0x2a8   :  { %v903_v52 = vsel %vm60_vm1, %v899_v51, 0.0  ;;  %v891_v56 = vadd.f32 %v890_v9, %v360_v40 }
 0x2a9   :  { %v478_v57 = vrot.slane %v477_v53, 1  ;;  %v905_v54 = vadd.f32 %v904_v26, %v903_v52  ;;  %v902_v0 = vadd.f32 %v896_v55, %v1380_v42  ;;  %v511_v26 = vpop.permute.xlu0 %510 }
 0x2aa   :  { %v901_v58 = vadd.f32 %v891_v56, %v1382_v43 }
 0x2ab   :  { %v479_v11 = vadd.f32 %v478_v57, %v477_v53  ;;  %v908_v59 = vsel %vm60_vm1, %v902_v0, 0.0  ;;  %v531_v53 = vpop.permute.xlu1 %530 }
 0x2ac   :  { %v906_v39 = vsel %vm60_vm1, %v901_v58, 0.0 }
 0x2ad   :  { %v480_v13 = vmul.f32 0.03125, %v479_v11  ;;  %v907_v38 = vadd.f32 %v906_v39, %v905_v54  ;;  %v523_v57 = vpop.permute.xlu0 %522 }
 0x2af   :  { %v483_v60 = vsub.f32 %v465_v30, %v480_v13  ;;  %v484_v14 = vsub.f32 %v466_v25, %v480_v13  ;;  %v909_v61 = vadd.f32 %v908_v59, %v907_v38  ;;  %v481_v63 = vsub.f32 %v463_v29, %v480_v13  ;;  %v539_v56 = vpop.permute.xlu1 %538 }
 0x2b0   :  { %v482_v1 = vsub.f32 %v464_v10, %v480_v13 }
 0x2b1   :  { %v910_v62 = vrot.slane %v909_v61, 4  ;;  %v485_v2 = vmul.f32 %v481_v63, %v481_v63  ;;  %v487_v3 = vmul.f32 %v483_v60, %v483_v60  ;;  %v488_v43 = vmul.f32 %v484_v14, %v484_v14 }
 0x2b2   :  { %v486_v4 = vmul.f32 %v482_v1, %v482_v1 }
 0x2b3   :  { %v911_v5 = vadd.f32 %v910_v62, %v909_v61  ;;  %v489_v42 = vsel %vm60_vm1, %v485_v2, 0.0  ;;  %v492_v18 = vsel %vm60_vm1, %v487_v3, 0.0  ;;  %v494_v20 = vsel %vm60_vm1, %v488_v43, 0.0  ;;  %v543_v61 = vpop.permute.xlu1 %542  ;;  %v535_v62 = vpop.permute.xlu0 %534 }
 0x2b4   :  { %v490_v12 = vsel %vm60_vm1, %v486_v4, 0.0 }
 0x2b5   :  { %v912_v16 = vrot.slane %v911_v5, 2  ;;  %v491_v17 = vadd.f32 %v490_v12, %v489_v42 }
 0x2b7   :  { %v913_v19 = vadd.f32 %v912_v16, %v911_v5  ;;  %v493_v40 = vadd.f32 %v492_v18, %v491_v17 }
 0x2b9   :  { %v914_v21 = vrot.slane %v913_v19, 1  ;;  %v495_v22 = vadd.f32 %v494_v20, %v493_v40 }
 0x2bb   :  { %v915_v7 = vadd.f32 %v914_v21, %v913_v19  ;;  %v496_v8 = vrot.slane %v495_v22, 4 }
 0x2bd   :  { %v916_v6 = vmul.f32 0.03125, %v915_v7  ;;  %v497_v10 = vadd.f32 %v496_v8, %v495_v22 }
 0x2bf   :  { %v919_v29 = vsub.f32 %v901_v58, %v916_v6  ;;  %v920_v32 = vsub.f32 %v902_v0, %v916_v6  ;;  %v498_v34 = vrot.slane %v497_v10, 2  ;;  %v917_v35 = vsub.f32 %v899_v51, %v916_v6 }
 0x2c0   :  { %v918_v36 = vsub.f32 %v900_v50, %v916_v6 }
 0x2c1   :  { %v499_v37 = vadd.f32 %v498_v34, %v497_v10  ;;  %v921_v28 = vmul.f32 %v917_v35, %v917_v35  ;;  %v923_v25 = vmul.f32 %v919_v29, %v919_v29  ;;  %v924_v23 = vmul.f32 %v920_v32, %v920_v32 }
 0x2c2   :  { %v922_v30 = vmul.f32 %v918_v36, %v918_v36 }
 0x2c3   :  { %v500_v31 = vrot.slane %v499_v37, 1  ;;  %v925_v44 = vsel %vm60_vm1, %v921_v28, 0.0  ;;  %v928_v47 = vsel %vm60_vm1, %v923_v25, 0.0  ;;  %v930_v49 = vsel %vm60_vm1, %v924_v23, 0.0 }
 0x2c4   :  { %v926_v45 = vsel %vm60_vm1, %v922_v30, 0.0 }
 0x2c5   :  { %v501_v27 = vadd.f32 %v500_v31, %v499_v37  ;;  %v927_v41 = vadd.f32 %v926_v45, %v925_v44 }
 0x2c7   :  { %v502_v15 = vmul.f32 0.03125, %v501_v27  ;;  %v929_v48 = vadd.f32 %v928_v47, %v927_v41 }
 0x2c9   :  { %v503_v50 = vadd.f32 1e-05, %v502_v15  ;;  %v931_v51 = vadd.f32 %v930_v49, %v929_v48 }
 0x2cb   :  { %1205 = vrsqrt.f32 %v503_v50  ;;  %v932_v24 = vrot.slane %v931_v51, 4 }
 0x2cd   :  { %v933_v55 = vadd.f32 %v932_v24, %v931_v51 }
 0x2cf   :  { %v934_v9 = vrot.slane %v933_v55, 2 }
 0x2d1   :  { %v935_v52 = vadd.f32 %v934_v9, %v933_v55 }
 0x2d3   :  { %v936_v54 = vrot.slane %v935_v52, 1 }
 0x2d5   :  { %v1206_v0 = vpop.eup %1205  ;;  %v937_v58 = vadd.f32 %v936_v54, %v935_v52 }
 0x2d6   :  { %v506_v11 = vmul.f32 %v1206_v0, %v482_v1  ;;  %v507_v39 = vmul.f32 %v1206_v0, %v483_v60  ;;  %v505_v13 = vmul.f32 %v1206_v0, %v481_v63  ;;  %v508_v38 = vmul.f32 %v1206_v0, %v484_v14 }
 0x2d7   :  { %v938_v59 = vmul.f32 0.03125, %v937_v58 }
 0x2d8   :  { %v526_v2 = vmul.f32 %v515_v33, %v506_v11  ;;  %v527_v3 = vmul.f32 %v519_v46, %v507_v39  ;;  %v525_v4 = vmul.f32 %v511_v26, %v505_v13  ;;  %v528_v5 = vmul.f32 %v523_v57, %v508_v38 }
 0x2d9   :  { %v939_v42 = vadd.f32 1e-05, %v938_v59 }
 0x2da   :  { %v545_v43 = vadd.f32 %v531_v53, %v525_v4  ;;  %v547_v12 = vadd.f32 %v539_v56, %v527_v3  ;;  %v548_v16 = vadd.f32 %v543_v61, %v528_v5  ;;  %v546_v17 = vadd.f32 %v535_v62, %v526_v2 }
 0x2db   :  { %1207 = vrsqrt.f32 %v939_v42 }
 0x2dc   :  { %549 = vst.msk [vmem:[%s1543_s5] sm:$0xff] %vm60_vm1, %v545_v43  ;;  %551 = vst.msk [vmem:[%s1543_s5 + $0x10] sm:$0xff] %vm60_vm1, %v547_v12 }
 0x2dd   :  { %552 = vst.msk [vmem:[%s1543_s5 + $0x18] sm:$0xff] %vm60_vm1, %v548_v16  ;;  %550 = vst.msk [vmem:[%s1543_s5 + $0x8] sm:$0xff] %vm60_vm1, %v546_v17 }
 0x2e5   :  { %v1208_v60 = vpop.eup %1207 }
 0x2e6   :  { %v942_v14 = vmul.f32 %v1208_v60, %v918_v36  ;;  %v943_v63 = vmul.f32 %v1208_v60, %v919_v29  ;;  %v941_v1 = vmul.f32 %v1208_v60, %v917_v35  ;;  %v944_v18 = vmul.f32 %v1208_v60, %v920_v32 }
 0x2e8   :  { %v946_v19 = vmul.f32 %v942_v14, %v515_v33  ;;  %v947_v40 = vmul.f32 %v943_v63, %v519_v46  ;;  %v945_v20 = vmul.f32 %v941_v1, %v511_v26  ;;  %v948_v21 = vmul.f32 %v944_v18, %v523_v57 }
 0x2ea   :  { %v949_v22 = vadd.f32 %v945_v20, %v531_v53  ;;  %v951_v7 = vadd.f32 %v947_v40, %v539_v56  ;;  %v952_v8 = vadd.f32 %v948_v21, %v543_v61  ;;  %v950_v6 = vadd.f32 %v946_v19, %v535_v62 }
 0x2ec   :  { %994 = vst.msk [vmem:[%s1543_s5 + $0x20] sm:$0xff] %vm60_vm1, %v949_v22  ;;  %996 = vst.msk [vmem:[%s1543_s5 + $0x30] sm:$0xff] %vm60_vm1, %v951_v7 }
 0x2ed   :  { %997 = vst.msk [vmem:[%s1543_s5 + $0x38] sm:$0xff] %vm60_vm1, %v952_v8  ;;  %995 = vst.msk [vmem:[%s1543_s5 + $0x28] sm:$0xff] %vm60_vm1, %v950_v6 }

</bundles_post_ra>
